<compile_context>
chip_gen: v7x
topology: tpu7x:2x2x1
jax: 0.10.0
libtpu: 0.0.40
codegen_flags: <defaults>
</compile_context>

<pallas_src>
import functools

import jax
import jax.numpy as jnp
from jax.experimental import pallas as pl
from jax.experimental.pallas import tpu as pltpu

_VMEM_LIMIT_BYTES = 32 * 1024 * 1024      # safe on v5e/v6e (128 MiB) and v7x (64 MiB)
_BN_EPS = 1e-5


def _pick_tile_rows(l_out: int, max_tile_rows: int) -> int:
    """Largest row tile that divides l_out and is a multiple of 8 (sublane),
    capped at max_tile_rows; falls back to the whole axis (always legal)."""
    if l_out <= max_tile_rows:
        return l_out
    for cand in range(min(max_tile_rows, l_out), 7, -1):
        if cand % 8 == 0 and l_out % cand == 0:
            return cand
    return l_out


def _conv_stats_kernel(x_ref, xprev_ref, xnext_ref, wbig_ref, w0_ref, w2_ref,
                       y_ref, s1_ref, s2_ref, *, c):
    """Phase 1: circular Conv1d(k=3) on one row tile + per-batch BN statistics.

    x_ref:     (1, tile, 1, 2C) bf16  pair rows [x[2j] | x[2j+1]] of one batch
    xprev_ref: (1, 1, 1, 2C)    bf16  pair row (t*tile - 1) mod l_out (circular)
    xnext_ref: (1, 1, 1, 2C)    bf16  pair row ((t+1)*tile) mod l_out (circular)
    wbig_ref:  (2C, 2C) bf16  [[W1t, W0t], [W2t, W1t]]          (VMEM resident)
    w0_ref:    (C, C)   bf16  W[:, :, 0].T                      (VMEM resident)
    w2_ref:    (C, C)   bf16  W[:, :, 2].T                      (VMEM resident)
    y_ref:     (1, tile, 1, 2C) bf16  conv output pairs [y[2j] | y[2j+1]]
    s1_ref:    (1, 1, C) f32  per-batch running sum    (resident over t axis)
    s2_ref:    (1, 1, C) f32  per-batch running sum-of-squares
    """
    t = pl.program_id(1)
    rows = x_ref.shape[1]
    f32 = jnp.float32

    xp = x_ref[0, :, 0, :]                       # [rows, 2C] bf16
    x_e = xp[:, :c]                              # x[2j]
    x_o = xp[:, c:]                              # x[2j+1]

    # In-pair taps of both parities from ONE big MXU matmul:
    #   y_head[:, :C] = x_e@W1t + x_o@W2t ,  y_head[:, C:] = x_e@W0t + x_o@W1t
    y_head = jnp.dot(xp, wbig_ref[...], preferred_element_type=f32)   # [rows, 2C]

    # Cross-pair taps: matmul the un-shifted operands, then shift the f32
    # results with an XLU roll + iota-mask select (no VMEM scratch).
    p = jnp.dot(x_o, w0_ref[...], preferred_element_type=f32)         # x_o[j] @ W0t
    q = jnp.dot(x_e, w2_ref[...], preferred_element_type=f32)         # x_e[j] @ W2t
    p_halo = jnp.dot(xprev_ref[0, :, 0, c:], w0_ref[...],
                     preferred_element_type=f32)                      # [1, C]
    q_halo = jnp.dot(xnext_ref[0, :, 0, :c], w2_ref[...],
                     preferred_element_type=f32)                      # [1, C]

    row = jax.lax.broadcasted_iota(jnp.int32, (rows, c), 0)
    p_prev = jnp.where(row == 0, p_halo, pltpu.roll(p, 1, axis=0))          # x_o[j-1]@W0t
    q_next = jnp.where(row == rows - 1, q_halo,
                       pltpu.roll(q, rows - 1, axis=0))                     # x_e[j+1]@W2t

    # Conv bias dropped on purpose: a per-channel constant cancels exactly in
    # training-mode BatchNorm (shifts the mean, leaves the variance unchanged).
    y_e = y_head[:, :c] + p_prev                 # conv output at even positions
    y_o = y_head[:, c:] + q_next                 # conv output at odd positions

    y_ref[0, :, 0, :] = jnp.concatenate([y_e, y_o], axis=1).astype(y_ref.dtype)

    # Per-batch BN statistics accumulated across the 'arbitrary' row-tile axis.
    # TODO(synk): for very large B*L, accumulate around a per-channel offset
    # (or per-tile two-pass) to avoid E[x^2]-E[x]^2 cancellation in f32.
    @pl.when(t == 0)
    def _():
        s1_ref[...] = jnp.zeros_like(s1_ref)
        s2_ref[...] = jnp.zeros_like(s2_ref)

    ts1 = jnp.sum(y_e, axis=0, keepdims=True) + jnp.sum(y_o, axis=0, keepdims=True)
    ts2 = (jnp.sum(y_e * y_e, axis=0, keepdims=True)
           + jnp.sum(y_o * y_o, axis=0, keepdims=True))
    s1_ref[...] += ts1[None]
    s2_ref[...] += ts2[None]


def _norm_act_pool_kernel(y_ref, yprev_ref, scale_ref, shift_ref, out_ref, *, c):
    """Phase 2: fused BatchNorm apply + ELU + MaxPool1d(k=3, s=2, p=1) per tile.

    y_ref:     (1, tile, 1, 2C) bf16  conv pairs [y[2j] | y[2j+1]]
    yprev_ref: (1, 1, 1, 2C)    bf16  pair row (t*tile - 1) mod l_out (pool halo)
    scale_ref: (1, C) f32  gamma * rsqrt(var + eps)               (VMEM resident)
    shift_ref: (1, C) f32  beta - mean * scale                    (VMEM resident)
    out_ref:   (1, tile, 1, C) f32  pooled output rows
    """
    t = pl.program_id(1)
    rows = y_ref.shape[1]
    f32 = jnp.float32

    yp = y_ref[0, :, 0, :].astype(f32)           # [rows, 2C]
    scale = scale_ref[...]                       # [1, C]
    shift = shift_ref[...]

    z_e = yp[:, :c] * scale + shift
    z_o = yp[:, c:] * scale + shift
    a_e = jnp.where(z_e > 0, z_e, jnp.exp(jnp.minimum(z_e, 0.0)) - 1.0)   # ELU(1)
    a_o = jnp.where(z_o > 0, z_o, jnp.exp(jnp.minimum(z_o, 0.0)) - 1.0)

    # Pool left neighbour of row 0: ELU(norm(y_o)) of the previous pair row.
    zh = yprev_ref[0, :, 0, c:].astype(f32) * scale + shift               # [1, C]
    ah = jnp.where(zh > 0, zh, jnp.exp(jnp.minimum(zh, 0.0)) - 1.0)

    # out[j] = max(a[2j-1], a[2j], a[2j+1]) = max(a_o[j-1], a_e[j], a_o[j]);
    # at the very first row of each batch the left pad is -inf (ELU >= -1, so
    # -1e30 is a safe stand-in).
    row = jax.lax.broadcasted_iota(jnp.int32, (rows, c), 0)
    global_row = row + t * rows                  # pair-row index within the batch
    a_o_prev = jnp.where(row == 0, ah, pltpu.roll(a_o, 1, axis=0))
    a_o_prev = jnp.where(global_row == 0, jnp.full_like(a_o_prev, -1e30), a_o_prev)

    out_ref[0, :, 0, :] = jnp.maximum(jnp.maximum(a_o_prev, a_e), a_o)


@functools.partial(jax.jit, static_argnames=("max_tile_rows",))
def conv_layer_forward(x, conv_w, conv_b, bn_gamma, bn_beta, *, max_tile_rows=512):
    """x: [B, L, C] (same layout as the PyTorch module input). Returns [B, L//2, C].

    conv_b is accepted for interface parity but not used: it is mathematically
    a no-op in front of training-mode BatchNorm.
    """
    del conv_b
    B, L, C = x.shape
    if L % 2 != 0:
        # TODO(synk): odd sequence lengths need an extra right-edge pool-pad path.
        raise NotImplementedError("kernel assumes an even sequence length L")
    l_out = L // 2                       # == floor((L + 2 - 3) / 2) + 1 for even L
    tile = _pick_tile_rows(l_out, max_tile_rows)
    num_tiles = l_out // tile
    two_c = 2 * C

    # Free relayout: [B, L, C] -> [B, l_out, 1, 2C]; row j holds (x[2j], x[2j+1]).
    # bf16 feed: the kernel only consumes x through the bf16 MXU, so an f32
    # load would double the dominant HBM read for no precision benefit.
    x_pairs = x.astype(jnp.bfloat16).reshape(B, l_out, 1, two_c)

    # Conv weights: W[:, :, k] maps x[l+k-1] -> y[l];  wt[k] = W[:, :, k].T
    wt = jnp.transpose(conv_w, (2, 1, 0)).astype(jnp.float32)       # [3, C_in, C_out]
    w0t, w1t, w2t = wt[0], wt[1], wt[2]
    w_big = jnp.concatenate(
        [jnp.concatenate([w1t, w0t], axis=1),
         jnp.concatenate([w2t, w1t], axis=1)], axis=0).astype(jnp.bfloat16)  # [2C, 2C]

    tile_spec_2c = pl.BlockSpec((1, tile, 1, two_c), lambda b, t: (b, t, 0, 0))
    prev_row_spec = pl.BlockSpec(
        (1, 1, 1, two_c), lambda b, t: (b, (t * tile + l_out - 1) % l_out, 0, 0))
    next_row_spec = pl.BlockSpec(
        (1, 1, 1, two_c), lambda b, t: (b, ((t + 1) * tile) % l_out, 0, 0))
    # Constant index_map: DMA'd once, VMEM-resident across all grid steps.
    resident = lambda shape: pl.BlockSpec(shape, lambda b, t: (0,) * len(shape))

    # ---- Phase 1: conv + per-batch sum / sum-of-squares (BN pass 1) -----------
    y_pairs, s1, s2 = pl.pallas_call(
        functools.partial(_conv_stats_kernel, c=C),
        grid=(B, num_tiles),
        in_specs=[tile_spec_2c, prev_row_spec, next_row_spec,
                  resident((two_c, two_c)), resident((C, C)), resident((C, C))],
        out_specs=(tile_spec_2c,
                   pl.BlockSpec((1, 1, C), lambda b, t: (b, 0, 0)),
                   pl.BlockSpec((1, 1, C), lambda b, t: (b, 0, 0))),
        out_shape=(jax.ShapeDtypeStruct((B, l_out, 1, two_c), jnp.bfloat16),
                   jax.ShapeDtypeStruct((B, 1, C), jnp.float32),
                   jax.ShapeDtypeStruct((B, 1, C), jnp.float32)),
        compiler_params=pltpu.CompilerParams(
            dimension_semantics=("parallel", "arbitrary"),
            vmem_limit_bytes=_VMEM_LIMIT_BYTES),
    )(x_pairs, x_pairs, x_pairs, w_big,
      w0t.astype(jnp.bfloat16), w2t.astype(jnp.bfloat16))

    # ---- Tiny glue (XLA): combine per-batch partials into BN scale / shift ----
    n = float(B * L)
    mean = jnp.sum(s1, axis=0) / n                                   # [1, C]
    var = jnp.maximum(jnp.sum(s2, axis=0) / n - mean * mean, 0.0)    # biased variance
    scale = bn_gamma.reshape(1, C).astype(jnp.float32) * jax.lax.rsqrt(var + _BN_EPS)
    shift = bn_beta.reshape(1, C).astype(jnp.float32) - mean * scale

    # ---- Phase 2: normalize + ELU + stride-2 max-pool (fully parallel) --------
    out = pl.pallas_call(
        functools.partial(_norm_act_pool_kernel, c=C),
        grid=(B, num_tiles),
        in_specs=[tile_spec_2c, prev_row_spec,
                  resident((1, C)), resident((1, C))],
        out_specs=pl.BlockSpec((1, tile, 1, C), lambda b, t: (b, t, 0, 0)),
        out_shape=jax.ShapeDtypeStruct((B, l_out, 1, C), jnp.float32),
        compiler_params=pltpu.CompilerParams(
            dimension_semantics=("parallel", "parallel"),
            vmem_limit_bytes=_VMEM_LIMIT_BYTES),
    )(y_pairs, y_pairs, scale, shift)

    return out.reshape(B, l_out, C)              # free reshape, no transpose


def _reference_conv_layer(x, conv_w, conv_b, bn_gamma, bn_beta):
    """Pure-JAX/XLA f32 reference with the exact PyTorch ConvLayer semantics."""
    B, L, C = x.shape
    xt = jnp.transpose(x, (0, 2, 1))                                   # [B, C, L]
    xpad = jnp.concatenate([xt[:, :, -1:], xt, xt[:, :, :1]], axis=2)  # circular pad
    y = jnp.zeros((B, C, L), jnp.float32)
    for k in range(3):
        y = y + jnp.einsum('oc,bcl->bol', conv_w[:, :, k], xpad[:, :, k:k + L])
    y = y + conv_b[None, :, None]
    mean = jnp.mean(y, axis=(0, 2), keepdims=True)
    var = jnp.mean((y - mean) ** 2, axis=(0, 2), keepdims=True)        # biased
    z = (y - mean) * jax.lax.rsqrt(var + 1e-5)
    z = z * bn_gamma[None, :, None] + bn_beta[None, :, None]
    a = jnp.where(z > 0, z, jnp.exp(z) - 1.0)
    ninf = jnp.full((B, C, 1), -jnp.inf, jnp.float32)
    apad = jnp.concatenate([ninf, a, ninf], axis=2)
    l_out = (L + 2 - 3) // 2 + 1
    pooled = jnp.stack([jnp.max(apad[:, :, 2 * p:2 * p + 3], axis=2)
                        for p in range(l_out)], axis=2)                # [B, C, l_out]
    return jnp.transpose(pooled, (0, 2, 1))                            # [B, l_out, C]


if __name__ == "__main__":
    key = jax.random.PRNGKey(0)
    # Config 1: one row tile per batch.  Config 2: forces 2 row tiles per batch
    # so the cross-tile halo path (conv wrap + pool left neighbour) is exercised.
    configs = [
        dict(B=2, L=16, C=8, max_tile_rows=512),
        dict(B=2, L=32, C=8, max_tile_rows=8),
    ]
    for cfg in configs:
        B, L, C = cfg["B"], cfg["L"], cfg["C"]
        key, kx, kw, kb, kg, kbe = jax.random.split(key, 6)
        x = jax.random.normal(kx, (B, L, C), dtype=jnp.float32)
        conv_w = 0.1 * jax.random.normal(kw, (C, C, 3), dtype=jnp.float32)
        conv_b = 0.1 * jax.random.normal(kb, (C,), dtype=jnp.float32)
        bn_gamma = 1.0 + 0.1 * jax.random.normal(kg, (C,), dtype=jnp.float32)
        bn_beta = 0.1 * jax.random.normal(kbe, (C,), dtype=jnp.float32)

        out = conv_layer_forward(x, conv_w, conv_b, bn_gamma, bn_beta,
                                 max_tile_rows=cfg["max_tile_rows"])
        out = jax.block_until_ready(out)
        ref = _reference_conv_layer(x, conv_w, conv_b, bn_gamma, bn_beta)

        assert out.shape == (B, L // 2, C), out.shape
        assert bool(jnp.all(jnp.isfinite(out)))
        err = float(jnp.max(jnp.abs(out - ref)))
        # bf16 MXU inputs + bf16 conv intermediate -> ~1e-2-level deviation.
        assert err < 3e-2, err
    print("KERNEL_OK")
</pallas_src>

<mosaic_0001>
module attributes {stable_mosaic.version = 11 : i64} {
  func.func @_norm_act_pool_kernel(%arg0: i32, %arg1: i32, %arg2: memref<1x8x1x16xbf16, #tpu.memory_space<vmem>>, %arg3: memref<1x1x1x16xbf16, #tpu.memory_space<vmem>>, %arg4: memref<1x8xf32, #tpu.memory_space<vmem>>, %arg5: memref<1x8xf32, #tpu.memory_space<vmem>>, %arg6: memref<1x8x1x8xf32, #tpu.memory_space<vmem>>) attributes {dimension_semantics = [#tpu.dimension_semantics<parallel>, #tpu.dimension_semantics<parallel>], iteration_bounds = array<i64: 2, 1>, scalar_prefetch = 0 : i64, scratch_operands = 0 : i64, tpu.core_type = #tpu.core_type<tc>, window_params = [{transform_indices = @transform_0, window_bounds = array<i64: 1, 8, 1, 16>}, {transform_indices = @transform_1, window_bounds = array<i64: 1, 1, 1, 16>}, {pipeline_mode = #tpu.pipeline_mode<synchronous>, transform_indices = @transform_2, window_bounds = array<i64: 1, 8>}, {pipeline_mode = #tpu.pipeline_mode<synchronous>, transform_indices = @transform_3, window_bounds = array<i64: 1, 8>}, {transform_indices = @transform_4, window_bounds = array<i64: 1, 8, 1, 8>}]} {
    %c0 = arith.constant 0 : index
    %c0_0 = arith.constant 0 : index
    %c0_1 = arith.constant 0 : index
    %c0_2 = arith.constant 0 : index
    %0 = vector.load %arg2[%c0, %c0_0, %c0_1, %c0_2] : memref<1x8x1x16xbf16, #tpu.memory_space<vmem>>, vector<1x8x1x16xbf16>
    %1 = vector.shape_cast %0 : vector<1x8x1x16xbf16> to vector<8x16xbf16>
    %2 = arith.extf %1 : vector<8x16xbf16> to vector<8x16xf32>
    %c0_3 = arith.constant 0 : index
    %c0_4 = arith.constant 0 : index
    %3 = vector.load %arg4[%c0_3, %c0_4] : memref<1x8xf32, #tpu.memory_space<vmem>>, vector<1x8xf32>
    %c0_5 = arith.constant 0 : index
    %c0_6 = arith.constant 0 : index
    %4 = vector.load %arg5[%c0_5, %c0_6] : memref<1x8xf32, #tpu.memory_space<vmem>>, vector<1x8xf32>
    %5 = vector.extract_strided_slice %2 {offsets = [0, 0], sizes = [8, 8], strides = [1, 1]} : vector<8x16xf32> to vector<8x8xf32>
    %6 = vector.broadcast %3 : vector<1x8xf32> to vector<8x8xf32>
    %7 = arith.mulf %5, %6 : vector<8x8xf32>
    %8 = vector.broadcast %4 : vector<1x8xf32> to vector<8x8xf32>
    %9 = arith.addf %7, %8 : vector<8x8xf32>
    %10 = vector.extract_strided_slice %2 {offsets = [0, 8], sizes = [8, 8], strides = [1, 1]} : vector<8x16xf32> to vector<8x8xf32>
    %11 = vector.broadcast %3 : vector<1x8xf32> to vector<8x8xf32>
    %12 = arith.mulf %10, %11 : vector<8x8xf32>
    %13 = vector.broadcast %4 : vector<1x8xf32> to vector<8x8xf32>
    %14 = arith.addf %12, %13 : vector<8x8xf32>
    %cst = arith.constant 0.000000e+00 : f32
    %15 = vector.broadcast %cst : f32 to vector<8x8xf32>
    %16 = arith.cmpf ogt, %9, %15 : vector<8x8xf32>
    %cst_7 = arith.constant 0.000000e+00 : f32
    %17 = vector.broadcast %cst_7 : f32 to vector<8x8xf32>
    %18 = arith.minimumf %9, %17 : vector<8x8xf32>
    %19 = math.exp %18 : vector<8x8xf32>
    %cst_8 = arith.constant 1.000000e+00 : f32
    %20 = vector.broadcast %cst_8 : f32 to vector<8x8xf32>
    %21 = arith.subf %19, %20 : vector<8x8xf32>
    %22 = arith.select %16, %9, %21 : vector<8x8xi1>, vector<8x8xf32>
    %cst_9 = arith.constant 0.000000e+00 : f32
    %23 = vector.broadcast %cst_9 : f32 to vector<8x8xf32>
    %24 = arith.cmpf ogt, %14, %23 : vector<8x8xf32>
    %cst_10 = arith.constant 0.000000e+00 : f32
    %25 = vector.broadcast %cst_10 : f32 to vector<8x8xf32>
    %26 = arith.minimumf %14, %25 : vector<8x8xf32>
    %27 = math.exp %26 : vector<8x8xf32>
    %cst_11 = arith.constant 1.000000e+00 : f32
    %28 = vector.broadcast %cst_11 : f32 to vector<8x8xf32>
    %29 = arith.subf %27, %28 : vector<8x8xf32>
    %30 = arith.select %24, %14, %29 : vector<8x8xi1>, vector<8x8xf32>
    %c0_12 = arith.constant 0 : index
    %c0_13 = arith.constant 0 : index
    %c0_14 = arith.constant 0 : index
    %c8 = arith.constant 8 : index
    %31 = vector.load %arg3[%c0_12, %c0_13, %c0_14, %c8] : memref<1x1x1x16xbf16, #tpu.memory_space<vmem>>, vector<1x1x1x8xbf16>
    %32 = vector.shape_cast %31 : vector<1x1x1x8xbf16> to vector<1x8xbf16>
    %33 = arith.extf %32 : vector<1x8xbf16> to vector<1x8xf32>
    %34 = arith.mulf %33, %3 : vector<1x8xf32>
    %35 = arith.addf %34, %4 : vector<1x8xf32>
    %cst_15 = arith.constant 0.000000e+00 : f32
    %36 = vector.broadcast %cst_15 : f32 to vector<1x8xf32>
    %37 = arith.cmpf ogt, %35, %36 : vector<1x8xf32>
    %cst_16 = arith.constant 0.000000e+00 : f32
    %38 = vector.broadcast %cst_16 : f32 to vector<1x8xf32>
    %39 = arith.minimumf %35, %38 : vector<1x8xf32>
    %40 = math.exp %39 : vector<1x8xf32>
    %cst_17 = arith.constant 1.000000e+00 : f32
    %41 = vector.broadcast %cst_17 : f32 to vector<1x8xf32>
    %42 = arith.subf %40, %41 : vector<1x8xf32>
    %43 = arith.select %37, %35, %42 : vector<1x8xi1>, vector<1x8xf32>
    %44 = tpu.iota {dimensions = array<i32: 0>} : vector<8x8xi32>
    %c8_i32 = arith.constant 8 : i32
    %45 = arith.muli %arg1, %c8_i32 : i32
    %46 = vector.broadcast %45 : i32 to vector<8x8xi32>
    %47 = arith.addi %44, %46 : vector<8x8xi32>
    %c0_i32 = arith.constant 0 : i32
    %48 = vector.broadcast %c0_i32 : i32 to vector<8x8xi32>
    %49 = arith.cmpi eq, %44, %48 : vector<8x8xi32>
    %c1_i32 = arith.constant 1 : i32
    %50 = tpu.dynamic_rotate %30 by %c1_i32 dim 0 : vector<8x8xf32>, i32 -> vector<8x8xf32>
    %51 = vector.shape_cast %43 : vector<1x8xf32> to vector<1x8xf32>
    %52 = vector.broadcast %51 : vector<1x8xf32> to vector<8x8xf32>
    %53 = arith.select %49, %52, %50 : vector<8x8xi1>, vector<8x8xf32>
    %c0_i32_18 = arith.constant 0 : i32
    %54 = vector.broadcast %c0_i32_18 : i32 to vector<8x8xi32>
    %55 = arith.cmpi eq, %47, %54 : vector<8x8xi32>
    %cst_19 = arith.constant -1.000000e+30 : f32
    %56 = vector.broadcast %cst_19 : f32 to vector<8x8xf32>
    %57 = arith.select %55, %56, %53 : vector<8x8xi1>, vector<8x8xf32>
    %58 = arith.maximumf %57, %22 : vector<8x8xf32>
    %59 = arith.maximumf %58, %30 : vector<8x8xf32>
    %c0_20 = arith.constant 0 : index
    %c0_21 = arith.constant 0 : index
    %c0_22 = arith.constant 0 : index
    %c0_23 = arith.constant 0 : index
    %60 = vector.load %arg6[%c0_20, %c0_21, %c0_22, %c0_23] : memref<1x8x1x8xf32, #tpu.memory_space<vmem>>, vector<1x8x1x8xf32>
    %61 = vector.shape_cast %60 : vector<1x8x1x8xf32> to vector<8x8xf32>
    %62 = vector.shape_cast %59 : vector<8x8xf32> to vector<1x8x1x8xf32>
    tpu.vector_store %arg6[%c0_20, %c0_21, %c0_22, %c0_23], %62 {strides = array<i32>} : memref<1x8x1x8xf32, #tpu.memory_space<vmem>>, vector<1x8x1x8xf32>,
    return
  }
  func.func @transform_0(%arg0: i32, %arg1: i32) -> (i32, i32, i32, i32) {
    %c0_i32 = arith.constant 0 : i32
    %c0_i32_0 = arith.constant 0 : i32
    %c0_i32_1 = arith.constant 0 : i32
    return %arg0, %arg1, %c0_i32, %c0_i32_0 : i32, i32, i32, i32
  }
  func.func @transform_1(%arg0: i32, %arg1: i32) -> (i32, i32, i32, i32) {
    %c8_i32 = arith.constant 8 : i32
    %0 = arith.muli %arg1, %c8_i32 : i32
    %c8_i32_0 = arith.constant 8 : i32
    %1 = arith.addi %0, %c8_i32_0 : i32
    %c1_i32 = arith.constant 1 : i32
    %2 = arith.subi %1, %c1_i32 : i32
    %c8_i32_1 = arith.constant 8 : i32
    %c0_i32 = arith.constant 0 : i32
    %3 = arith.cmpi eq, %c8_i32_1, %c0_i32 : i32
    %c1_i32_2 = arith.constant 1 : i32
    %4 = arith.select %3, %c1_i32_2, %c8_i32_1 : i32
    %5 = arith.remsi %2, %4 : i32
    %c0_i32_3 = arith.constant 0 : i32
    %6 = arith.cmpi ne, %5, %c0_i32_3 : i32
    %c0_i32_4 = arith.constant 0 : i32
    %7 = arith.cmpi slt, %5, %c0_i32_4 : i32
    %c0_i32_5 = arith.constant 0 : i32
    %8 = arith.cmpi slt, %4, %c0_i32_5 : i32
    %9 = arith.xori %7, %8 : i1
    %10 = arith.andi %9, %6 : i1
    %11 = arith.addi %5, %4 : i32
    %12 = arith.select %10, %11, %5 : i32
    %c0_i32_6 = arith.constant 0 : i32
    %c0_i32_7 = arith.constant 0 : i32
    %c0_i32_8 = arith.constant 0 : i32
    return %arg0, %12, %c0_i32_6, %c0_i32_7 : i32, i32, i32, i32
  }
  func.func @transform_2(%arg0: i32, %arg1: i32) -> (i32, i32) {
    %c0_i32 = arith.constant 0 : i32
    %c0_i32_0 = arith.constant 0 : i32
    %c0_i32_1 = arith.constant 0 : i32
    return %c0_i32, %c0_i32_0 : i32, i32
  }
  func.func @transform_3(%arg0: i32, %arg1: i32) -> (i32, i32) {
    %c0_i32 = arith.constant 0 : i32
    %c0_i32_0 = arith.constant 0 : i32
    %c0_i32_1 = arith.constant 0 : i32
    return %c0_i32, %c0_i32_0 : i32, i32
  }
  func.func @transform_4(%arg0: i32, %arg1: i32) -> (i32, i32, i32, i32) {
    %c0_i32 = arith.constant 0 : i32
    %c0_i32_0 = arith.constant 0 : i32
    %c0_i32_1 = arith.constant 0 : i32
    return %arg0, %arg1, %c0_i32, %c0_i32_0 : i32, i32, i32, i32
  }
}

module attributes {stable_mosaic.version = 11 : i64} {
  func.func @_conv_stats_kernel(%arg0: i32, %arg1: i32, %arg2: memref<1x8x1x16xbf16, #tpu.memory_space<vmem>>, %arg3: memref<1x1x1x16xbf16, #tpu.memory_space<vmem>>, %arg4: memref<1x1x1x16xbf16, #tpu.memory_space<vmem>>, %arg5: memref<16x16xbf16, #tpu.memory_space<vmem>>, %arg6: memref<8x8xbf16, #tpu.memory_space<vmem>>, %arg7: memref<8x8xbf16, #tpu.memory_space<vmem>>, %arg8: memref<1x8x1x16xbf16, #tpu.memory_space<vmem>>, %arg9: memref<1x1x8xf32, #tpu.memory_space<vmem>>, %arg10: memref<1x1x8xf32, #tpu.memory_space<vmem>>) attributes {dimension_semantics = [#tpu.dimension_semantics<parallel>, #tpu.dimension_semantics<arbitrary>], iteration_bounds = array<i64: 2, 1>, scalar_prefetch = 0 : i64, scratch_operands = 0 : i64, tpu.core_type = #tpu.core_type<tc>, window_params = [{transform_indices = @transform_0, window_bounds = array<i64: 1, 8, 1, 16>}, {transform_indices = @transform_1, window_bounds = array<i64: 1, 1, 1, 16>}, {transform_indices = @transform_2, window_bounds = array<i64: 1, 1, 1, 16>}, {pipeline_mode = #tpu.pipeline_mode<synchronous>, transform_indices = @transform_3, window_bounds = array<i64: 16, 16>}, {pipeline_mode = #tpu.pipeline_mode<synchronous>, transform_indices = @transform_4, window_bounds = array<i64: 8, 8>}, {pipeline_mode = #tpu.pipeline_mode<synchronous>, transform_indices = @transform_5, window_bounds = array<i64: 8, 8>}, {transform_indices = @transform_6, window_bounds = array<i64: 1, 8, 1, 16>}, {transform_indices = @transform_7, window_bounds = array<i64: 1, 1, 8>}, {transform_indices = @transform_8, window_bounds = array<i64: 1, 1, 8>}]} {
    %c0 = arith.constant 0 : index
    %c0_0 = arith.constant 0 : index
    %c0_1 = arith.constant 0 : index
    %c0_2 = arith.constant 0 : index
    %0 = vector.load %arg2[%c0, %c0_0, %c0_1, %c0_2] : memref<1x8x1x16xbf16, #tpu.memory_space<vmem>>, vector<1x8x1x16xbf16>
    %1 = vector.shape_cast %0 : vector<1x8x1x16xbf16> to vector<8x16xbf16>
    %2 = vector.extract_strided_slice %1 {offsets = [0, 0], sizes = [8, 8], strides = [1, 1]} : vector<8x16xbf16> to vector<8x8xbf16>
    %3 = vector.extract_strided_slice %1 {offsets = [0, 8], sizes = [8, 8], strides = [1, 1]} : vector<8x16xbf16> to vector<8x8xbf16>
    %c0_3 = arith.constant 0 : index
    %c0_4 = arith.constant 0 : index
    %4 = vector.load %arg5[%c0_3, %c0_4] : memref<16x16xbf16, #tpu.memory_space<vmem>>, vector<16x16xbf16>
    %cst = arith.constant dense<0.000000e+00> : vector<8x16xf32>
    %5 = tpu.matmul %1, %4, %cst {dimension_numbers = #tpu.dot_dimension_numbers<[1], [0], [0], [1], [0, 0, 1, 1], [], []>} : vector<8x16xbf16>, vector<16x16xbf16>, vector<8x16xf32> -> vector<8x16xf32>
    %c0_5 = arith.constant 0 : index
    %c0_6 = arith.constant 0 : index
    %6 = vector.load %arg6[%c0_5, %c0_6] : memref<8x8xbf16, #tpu.memory_space<vmem>>, vector<8x8xbf16>
    %cst_7 = arith.constant dense<0.000000e+00> : vector<8x8xf32>
    %7 = tpu.matmul %3, %6, %cst_7 {dimension_numbers = #tpu.dot_dimension_numbers<[1], [0], [0], [1], [0, 0, 1, 1], [], []>} : vector<8x8xbf16>, vector<8x8xbf16>, vector<8x8xf32> -> vector<8x8xf32>
    %c0_8 = arith.constant 0 : index
    %c0_9 = arith.constant 0 : index
    %8 = vector.load %arg7[%c0_8, %c0_9] : memref<8x8xbf16, #tpu.memory_space<vmem>>, vector<8x8xbf16>
    %cst_10 = arith.constant dense<0.000000e+00> : vector<8x8xf32>
    %9 = tpu.matmul %2, %8, %cst_10 {dimension_numbers = #tpu.dot_dimension_numbers<[1], [0], [0], [1], [0, 0, 1, 1], [], []>} : vector<8x8xbf16>, vector<8x8xbf16>, vector<8x8xf32> -> vector<8x8xf32>
    %c0_11 = arith.constant 0 : index
    %c0_12 = arith.constant 0 : index
    %c0_13 = arith.constant 0 : index
    %c8 = arith.constant 8 : index
    %10 = vector.load %arg3[%c0_11, %c0_12, %c0_13, %c8] : memref<1x1x1x16xbf16, #tpu.memory_space<vmem>>, vector<1x1x1x8xbf16>
    %11 = vector.shape_cast %10 : vector<1x1x1x8xbf16> to vector<1x8xbf16>
    %c0_14 = arith.constant 0 : index
    %c0_15 = arith.constant 0 : index
    %12 = vector.load %arg6[%c0_14, %c0_15] : memref<8x8xbf16, #tpu.memory_space<vmem>>, vector<8x8xbf16>
    %cst_16 = arith.constant dense<0.000000e+00> : vector<1x8xf32>
    %13 = tpu.matmul %11, %12, %cst_16 {dimension_numbers = #tpu.dot_dimension_numbers<[1], [0], [0], [1], [0, 0, 1, 1], [], []>} : vector<1x8xbf16>, vector<8x8xbf16>, vector<1x8xf32> -> vector<1x8xf32>
    %c0_17 = arith.constant 0 : index
    %c0_18 = arith.constant 0 : index
    %c0_19 = arith.constant 0 : index
    %c0_20 = arith.constant 0 : index
    %14 = vector.load %arg4[%c0_17, %c0_18, %c0_19, %c0_20] : memref<1x1x1x16xbf16, #tpu.memory_space<vmem>>, vector<1x1x1x8xbf16>
    %15 = vector.shape_cast %14 : vector<1x1x1x8xbf16> to vector<1x8xbf16>
    %c0_21 = arith.constant 0 : index
    %c0_22 = arith.constant 0 : index
    %16 = vector.load %arg7[%c0_21, %c0_22] : memref<8x8xbf16, #tpu.memory_space<vmem>>, vector<8x8xbf16>
    %cst_23 = arith.constant dense<0.000000e+00> : vector<1x8xf32>
    %17 = tpu.matmul %15, %16, %cst_23 {dimension_numbers = #tpu.dot_dimension_numbers<[1], [0], [0], [1], [0, 0, 1, 1], [], []>} : vector<1x8xbf16>, vector<8x8xbf16>, vector<1x8xf32> -> vector<1x8xf32>
    %18 = tpu.iota {dimensions = array<i32: 0>} : vector<8x8xi32>
    %c0_i32 = arith.constant 0 : i32
    %19 = vector.broadcast %c0_i32 : i32 to vector<8x8xi32>
    %20 = arith.cmpi eq, %18, %19 : vector<8x8xi32>
    %c1_i32 = arith.constant 1 : i32
    %21 = tpu.dynamic_rotate %7 by %c1_i32 dim 0 : vector<8x8xf32>, i32 -> vector<8x8xf32>
    %22 = vector.shape_cast %13 : vector<1x8xf32> to vector<1x8xf32>
    %23 = vector.broadcast %22 : vector<1x8xf32> to vector<8x8xf32>
    %24 = arith.select %20, %23, %21 : vector<8x8xi1>, vector<8x8xf32>
    %c7_i32 = arith.constant 7 : i32
    %25 = vector.broadcast %c7_i32 : i32 to vector<8x8xi32>
    %26 = arith.cmpi eq, %18, %25 : vector<8x8xi32>
    %c7_i32_24 = arith.constant 7 : i32
    %27 = tpu.dynamic_rotate %9 by %c7_i32_24 dim 0 : vector<8x8xf32>, i32 -> vector<8x8xf32>
    %28 = vector.shape_cast %17 : vector<1x8xf32> to vector<1x8xf32>
    %29 = vector.broadcast %28 : vector<1x8xf32> to vector<8x8xf32>
    %30 = arith.select %26, %29, %27 : vector<8x8xi1>, vector<8x8xf32>
    %31 = vector.extract_strided_slice %5 {offsets = [0, 0], sizes = [8, 8], strides = [1, 1]} : vector<8x16xf32> to vector<8x8xf32>
    %32 = arith.addf %31, %24 : vector<8x8xf32>
    %33 = vector.extract_strided_slice %5 {offsets = [0, 8], sizes = [8, 8], strides = [1, 1]} : vector<8x16xf32> to vector<8x8xf32>
    %34 = arith.addf %33, %30 : vector<8x8xf32>
    %35 = tpu.concatenate %32, %34 in 1 : vector<8x8xf32>, vector<8x8xf32> -> vector<8x16xf32>
    %36 = arith.truncf %35 : vector<8x16xf32> to vector<8x16xbf16>
    %c0_25 = arith.constant 0 : index
    %c0_26 = arith.constant 0 : index
    %c0_27 = arith.constant 0 : index
    %c0_28 = arith.constant 0 : index
    %37 = vector.load %arg8[%c0_25, %c0_26, %c0_27, %c0_28] : memref<1x8x1x16xbf16, #tpu.memory_space<vmem>>, vector<1x8x1x16xbf16>
    %38 = vector.shape_cast %37 : vector<1x8x1x16xbf16> to vector<8x16xbf16>
    %39 = vector.shape_cast %36 : vector<8x16xbf16> to vector<1x8x1x16xbf16>
    tpu.vector_store %arg8[%c0_25, %c0_26, %c0_27, %c0_28], %39 {strides = array<i32>} : memref<1x8x1x16xbf16, #tpu.memory_space<vmem>>, vector<1x8x1x16xbf16>,
    %c0_i32_29 = arith.constant 0 : i32
    %40 = arith.cmpi eq, %arg1, %c0_i32_29 : i32
    %41 = arith.extui %40 : i1 to i32
    %c0_i32_30 = arith.constant 0 : i32
    %42 = arith.cmpi ne, %41, %c0_i32_30 : i32
    scf.if %42 {
      %cst_47 = arith.constant 0.000000e+00 : f32
      %63 = vector.broadcast %cst_47 : f32 to vector<1x1x8xf32>
      %c0_48 = arith.constant 0 : index
      %c0_49 = arith.constant 0 : index
      %c0_50 = arith.constant 0 : index
      %64 = vector.load %arg9[%c0_48, %c0_49, %c0_50] : memref<1x1x8xf32, #tpu.memory_space<vmem>>, vector<1x1x8xf32>
      tpu.vector_store %arg9[%c0_48, %c0_49, %c0_50], %63 {strides = array<i32>} : memref<1x1x8xf32, #tpu.memory_space<vmem>>, vector<1x1x8xf32>,
      %cst_51 = arith.constant 0.000000e+00 : f32
      %65 = vector.broadcast %cst_51 : f32 to vector<1x1x8xf32>
      %c0_52 = arith.constant 0 : index
      %c0_53 = arith.constant 0 : index
      %c0_54 = arith.constant 0 : index
      %66 = vector.load %arg10[%c0_52, %c0_53, %c0_54] : memref<1x1x8xf32, #tpu.memory_space<vmem>>, vector<1x1x8xf32>
      tpu.vector_store %arg10[%c0_52, %c0_53, %c0_54], %65 {strides = array<i32>} : memref<1x1x8xf32, #tpu.memory_space<vmem>>, vector<1x1x8xf32>,
    } else {
    }
    %cst_31 = arith.constant dense<0.000000e+00> : vector<8xf32>
    %43 = vector.multi_reduction <add>, %32, %cst_31 [0] : vector<8x8xf32> to vector<8xf32>
    %44 = vector.shape_cast %43 : vector<8xf32> to vector<1x8xf32>
    %cst_32 = arith.constant dense<0.000000e+00> : vector<8xf32>
    %45 = vector.multi_reduction <add>, %34, %cst_32 [0] : vector<8x8xf32> to vector<8xf32>
    %46 = vector.shape_cast %45 : vector<8xf32> to vector<1x8xf32>
    %47 = arith.addf %44, %46 : vector<1x8xf32>
    %48 = arith.mulf %32, %32 : vector<8x8xf32>
    %cst_33 = arith.constant dense<0.000000e+00> : vector<8xf32>
    %49 = vector.multi_reduction <add>, %48, %cst_33 [0] : vector<8x8xf32> to vector<8xf32>
    %50 = vector.shape_cast %49 : vector<8xf32> to vector<1x8xf32>
    %51 = arith.mulf %34, %34 : vector<8x8xf32>
    %cst_34 = arith.constant dense<0.000000e+00> : vector<8xf32>
    %52 = vector.multi_reduction <add>, %51, %cst_34 [0] : vector<8x8xf32> to vector<8xf32>
    %53 = vector.shape_cast %52 : vector<8xf32> to vector<1x8xf32>
    %54 = arith.addf %50, %53 : vector<1x8xf32>
    %c0_35 = arith.constant 0 : index
    %c0_36 = arith.constant 0 : index
    %c0_37 = arith.constant 0 : index
    %55 = vector.load %arg9[%c0_35, %c0_36, %c0_37] : memref<1x1x8xf32, #tpu.memory_space<vmem>>, vector<1x1x8xf32>
    %56 = vector.shape_cast %47 : vector<1x8xf32> to vector<1x1x8xf32>
    %57 = arith.addf %55, %56 : vector<1x1x8xf32>
    %c0_38 = arith.constant 0 : index
    %c0_39 = arith.constant 0 : index
    %c0_40 = arith.constant 0 : index
    %58 = vector.load %arg9[%c0_38, %c0_39, %c0_40] : memref<1x1x8xf32, #tpu.memory_space<vmem>>, vector<1x1x8xf32>
    tpu.vector_store %arg9[%c0_38, %c0_39, %c0_40], %57 {strides = array<i32>} : memref<1x1x8xf32, #tpu.memory_space<vmem>>, vector<1x1x8xf32>,
    %c0_41 = arith.constant 0 : index
    %c0_42 = arith.constant 0 : index
    %c0_43 = arith.constant 0 : index
    %59 = vector.load %arg10[%c0_41, %c0_42, %c0_43] : memref<1x1x8xf32, #tpu.memory_space<vmem>>, vector<1x1x8xf32>
    %60 = vector.shape_cast %54 : vector<1x8xf32> to vector<1x1x8xf32>
    %61 = arith.addf %59, %60 : vector<1x1x8xf32>
    %c0_44 = arith.constant 0 : index
    %c0_45 = arith.constant 0 : index
    %c0_46 = arith.constant 0 : index
    %62 = vector.load %arg10[%c0_44, %c0_45, %c0_46] : memref<1x1x8xf32, #tpu.memory_space<vmem>>, vector<1x1x8xf32>
    tpu.vector_store %arg10[%c0_44, %c0_45, %c0_46], %61 {strides = array<i32>} : memref<1x1x8xf32, #tpu.memory_space<vmem>>, vector<1x1x8xf32>,
    return
  }
  func.func @transform_0(%arg0: i32, %arg1: i32) -> (i32, i32, i32, i32) {
    %c0_i32 = arith.constant 0 : i32
    %c0_i32_0 = arith.constant 0 : i32
    %c0_i32_1 = arith.constant 0 : i32
    return %arg0, %arg1, %c0_i32, %c0_i32_0 : i32, i32, i32, i32
  }
  func.func @transform_1(%arg0: i32, %arg1: i32) -> (i32, i32, i32, i32) {
    %c8_i32 = arith.constant 8 : i32
    %0 = arith.muli %arg1, %c8_i32 : i32
    %c8_i32_0 = arith.constant 8 : i32
    %1 = arith.addi %0, %c8_i32_0 : i32
    %c1_i32 = arith.constant 1 : i32
    %2 = arith.subi %1, %c1_i32 : i32
    %c8_i32_1 = arith.constant 8 : i32
    %c0_i32 = arith.constant 0 : i32
    %3 = arith.cmpi eq, %c8_i32_1, %c0_i32 : i32
    %c1_i32_2 = arith.constant 1 : i32
    %4 = arith.select %3, %c1_i32_2, %c8_i32_1 : i32
    %5 = arith.remsi %2, %4 : i32
    %c0_i32_3 = arith.constant 0 : i32
    %6 = arith.cmpi ne, %5, %c0_i32_3 : i32
    %c0_i32_4 = arith.constant 0 : i32
    %7 = arith.cmpi slt, %5, %c0_i32_4 : i32
    %c0_i32_5 = arith.constant 0 : i32
    %8 = arith.cmpi slt, %4, %c0_i32_5 : i32
    %9 = arith.xori %7, %8 : i1
    %10 = arith.andi %9, %6 : i1
    %11 = arith.addi %5, %4 : i32
    %12 = arith.select %10, %11, %5 : i32
    %c0_i32_6 = arith.constant 0 : i32
    %c0_i32_7 = arith.constant 0 : i32
    %c0_i32_8 = arith.constant 0 : i32
    return %arg0, %12, %c0_i32_6, %c0_i32_7 : i32, i32, i32, i32
  }
  func.func @transform_2(%arg0: i32, %arg1: i32) -> (i32, i32, i32, i32) {
    %c1_i32 = arith.constant 1 : i32
    %0 = arith.addi %arg1, %c1_i32 : i32
    %c8_i32 = arith.constant 8 : i32
    %1 = arith.muli %0, %c8_i32 : i32
    %c8_i32_0 = arith.constant 8 : i32
    %c0_i32 = arith.constant 0 : i32
    %2 = arith.cmpi eq, %c8_i32_0, %c0_i32 : i32
    %c1_i32_1 = arith.constant 1 : i32
    %3 = arith.select %2, %c1_i32_1, %c8_i32_0 : i32
    %4 = arith.remsi %1, %3 : i32
    %c0_i32_2 = arith.constant 0 : i32
    %5 = arith.cmpi ne, %4, %c0_i32_2 : i32
    %c0_i32_3 = arith.constant 0 : i32
    %6 = arith.cmpi slt, %4, %c0_i32_3 : i32
    %c0_i32_4 = arith.constant 0 : i32
    %7 = arith.cmpi slt, %3, %c0_i32_4 : i32
    %8 = arith.xori %6, %7 : i1
    %9 = arith.andi %8, %5 : i1
    %10 = arith.addi %4, %3 : i32
    %11 = arith.select %9, %10, %4 : i32
    %c0_i32_5 = arith.constant 0 : i32
    %c0_i32_6 = arith.constant 0 : i32
    %c0_i32_7 = arith.constant 0 : i32
    return %arg0, %11, %c0_i32_5, %c0_i32_6 : i32, i32, i32, i32
  }
  func.func @transform_3(%arg0: i32, %arg1: i32) -> (i32, i32) {
    %c0_i32 = arith.constant 0 : i32
    %c0_i32_0 = arith.constant 0 : i32
    %c0_i32_1 = arith.constant 0 : i32
    return %c0_i32, %c0_i32_0 : i32, i32
  }
  func.func @transform_4(%arg0: i32, %arg1: i32) -> (i32, i32) {
    %c0_i32 = arith.constant 0 : i32
    %c0_i32_0 = arith.constant 0 : i32
    %c0_i32_1 = arith.constant 0 : i32
    return %c0_i32, %c0_i32_0 : i32, i32
  }
  func.func @transform_5(%arg0: i32, %arg1: i32) -> (i32, i32) {
    %c0_i32 = arith.constant 0 : i32
    %c0_i32_0 = arith.constant 0 : i32
    %c0_i32_1 = arith.constant 0 : i32
    return %c0_i32, %c0_i32_0 : i32, i32
  }
  func.func @transform_6(%arg0: i32, %arg1: i32) -> (i32, i32, i32, i32) {
    %c0_i32 = arith.constant 0 : i32
    %c0_i32_0 = arith.constant 0 : i32
    %c0_i32_1 = arith.constant 0 : i32
    return %arg0, %arg1, %c0_i32, %c0_i32_0 : i32, i32, i32, i32
  }
  func.func @transform_7(%arg0: i32, %arg1: i32) -> (i32, i32, i32) {
    %c0_i32 = arith.constant 0 : i32
    %c0_i32_0 = arith.constant 0 : i32
    %c0_i32_1 = arith.constant 0 : i32
    return %arg0, %c0_i32, %c0_i32_0 : i32, i32, i32
  }
  func.func @transform_8(%arg0: i32, %arg1: i32) -> (i32, i32, i32) {
    %c0_i32 = arith.constant 0 : i32
    %c0_i32_0 = arith.constant 0 : i32
    %c0_i32_1 = arith.constant 0 : i32
    return %arg0, %c0_i32, %c0_i32_0 : i32, i32, i32
  }
}

</mosaic_0001>

<bundles_post_ra>
// kernel: conv_layer_forward.3
= control target key start
LH: loop header
LB: loop body
LE: loop exit
PB: predicated region body
PF: predicated region fallthrough
CT: control target
= control target key end

     0   :  { %9 = vsyncpa [#allocation3], 0  ;;  %s1627_s0 = inlined_call_operand.vmem [shape: bf16[2,8,1,16], index: 0, kind: input, shape index: {}, may-alias: {0,1}]   ;;  %s1628_s1 = inlined_call_operand.vmem [shape: bf16[2,8,1,16], index: 1, kind: input, shape index: {}, may-alias: {0,1}]   ;;  %s1629_s2 = inlined_call_operand.vmem [shape: f32[1,8], index: 2, kind: input, shape index: {}]   ;;  %s1630_s3 = inlined_call_operand.vmem [shape: f32[1,8], index: 3, kind: input, shape index: {}]   ;;  %s1631_s4 = inlined_call_operand.hbm [shape: f32[2,8,1,8], index: 4, kind: output, shape index: {}]  }
   0x1   :  { %11 = vsyncpa [#allocation3 + $0x1], 0  ;;  %s1232_s15 = smov 0   ;;  %s1234_s16 = smov 0  }
   0x2   :  { %s1236_s17 = smov 0   ;;  %s1238_s18 = smov 0  }
   0x3   :  { %s1240_s19 = smov 0   ;;  %s1242_s20 = smov 0  }
   0x4 LB: > { %s992_s21 = sadd.s32 4294967295, %s1197_s20   ;;  %s993_s22 = sadd.s32 4294967294, %s1197_s20   ;;  %s1197_s20 = sphi %s1242_s20, %s17_s20   ;;  %s1193_s19 = sphi %s1240_s19, %s1638_s19   ;;  %s1189_s18 = sphi %s1238_s18, %s1637_s18   ;;  %s1185_s17 = sphi %s1236_s17, %s1636_s17   ;;  %s1181_s16 = sphi %s1234_s16, %s1635_s16   ;;  %s1177_s15 = sphi %s1232_s15, %s1634_s15  }
   0x5   : > { %s29_s23 = sadd.s32 1, %s1193_s19  ;;  %s164_s24 = sadd.s32 1, %s1185_s17 }
   0x6   : > { %p31_p0 = scmp.ge.s32.totalorder %s29_s23, 2  ;;  %p174_p1 = scmp.ne.s32.totalorder %s1185_s17, %s1181_s16 }
   0x7   : > { %p175_p2 = scmp.eq.s32.totalorder %s992_s21, 1  ;;  %p180_p3 = scmp.ne.s32.totalorder %s1181_s16, %s1177_s15 }
   0x8   : > { %s1640_s23 = smov (%p31_p0, %s29_s23), 0  ;;  %p181_p5 = scmp.eq.s32.totalorder %s993_s22, 1 }
   0x9   : > { %p1272_p4 = por %p175_p2, %p174_p1  ;;  %s159_s26 = ssub.s32 %s1193_s19, %s1640_s23 }
   0xa   : > { %p996_p6 = scmp.ge.s32.totalorder %s1197_s20, 1  ;;  %p162_p7 = scmp.eq.s32.totalorder %s159_s26, 0 }
   0xb   : > { %p1279_p8 = por %p181_p5, %p180_p3  ;;  %p255_p9 = scmp.lt.s32.totalorder %s1197_s20, 3 }
   0xc   : > { %s1285_s28 = scalar_select %p162_p7, %s1185_s17, %s164_s24  }
   0xd   : > { %p256_p10 = pnand %p996_p6, %p255_p9 }
   0xe   : > { %v369_v0 = vlaneseq (!%p256_p10)  ;;  %p306_p11 = scmp.lt.s32.totalorder (!%p256_p10), %s1189_s18, 1  ;;  %v1199_v1 = vmov (!%p256_p10), 1983009808   ;;  %v1296_v4 = vld [vmem:[%s1629_s2] sm:$0x1] (!%p256_p10)  ;;  %s1200_s12 = smov (!%p256_p10), 8  }
   0xf   : > { %259 = sbr.rel (%p256_p10) target bundleno = 580 (0x244), region = 36  ;;  %v375_v2 = vunpack.c.l.s4 (!%p256_p10), %v1199_v1  ;;  %v1301_v6 = vld [vmem:[%s1630_s3] sm:$0x1] (!%p256_p10)  ;;  %v1201_v61 = vmov (!%p256_p10), 857870592   ;;  %vm688_vm4 = vcmask (!%p256_p10), 1041409  }
  0x10   : > { %v1288_v3 = vshrl.u32 (!%p256_p10), %v369_v0, 7  ;;  %v615_v62 = vunpack.c.l.s4 (!%p256_p10), %v1201_v61  ;;  %vm690_vm6 = vcmask (!%p256_p10), 1042434   ;;  %vm692_vm9 = vcmask (!%p256_p10), 1043459   ;;  %s1202_s13 = smov (!%p256_p10), 120   ;;  %s302_s26 = sand.u32 (!%p256_p10), 1, %s1181_s16  }
  0x11   : > { %v376_v5 = vunpack.c.0.s8 (!%p256_p10), %v375_v2  ;;  %vm694_vm11 = vcmask (!%p256_p10), 1044484   ;;  %vm696_vm13 = vcmask (!%p256_p10), 1045509   ;;  %s1022_s5 = sshll.u32 (!%p256_p10), %s1189_s18, 7 }
  0x12   : > { %v1304_v7 = vsub.s32 (!%p256_p10), 0, %v1288_v3  ;;  %v616_v63 = vunpack.c.0.s8 (!%p256_p10), %v615_v62  ;;  %s1575_s9 = scalar_lea.hbm (!%p256_p10), %s1631_s4, %s1022_s5 }
  0x13   : > { %v379_v8 = vsub.s32 (!%p256_p10), %v376_v5, %v1288_v3 }
  0x14   : > { %v372_v9 = vrot.slane (!%p256_p10), %v1296_v4, %v1304_v7  ;;  %v414_v10 = vrot.slane (!%p256_p10), %v1301_v6, %v1304_v7  ;;  %v1400_v0 = vsub.s32 (!%p256_p10), %v616_v63, %v1288_v3 }
  0x16   : > { %s1291_s29 = scalar_select %p306_p11, %s1189_s18, 1  ;;  %v380_v13 = vrot.slane %v372_v9, %v379_v8  ;;  %v422_v14 = vrot.slane %v414_v10, %v379_v8  ;;  %v373_v23 = vcombine.high %v372_v9, %v372_v9  ;;  %v415_v32 = vcombine.high %v414_v10, %v414_v10 }
  0x17   : > { %v620_v1 = vrot.slane %v1296_v4, %v1400_v0  ;;  %v631_v2 = vrot.slane %v1301_v6, %v1400_v0  ;;  %s1581_s18 = scalar_lea.sflag [#allocation3], %s302_s26 }
  0x18   : > { %s998_s8 = sshll.u32 %s1291_s29, 3  ;;  %452 = vrot.lane.b32.xlu0 %v380_v13, %s1200_s12  ;;  %v388_v16 = vcombine.high %v380_v13, %v380_v13  ;;  %v432_v19 = vrot.slane %v422_v14, 1  ;;  %v430_v20 = vcombine.high %v422_v14, %v422_v14  ;;  %v390_v22 = vrot.slane %v380_v13, 1  ;;  %s997_s29 = sshll.u32 %s302_s26, 3 }
  0x19   : > { %s1313_s11 = scalar_lea.vmem %s1627_s0, %s998_s8  ;;  %v387_v27 = vrot.slane %v373_v23, %v379_v8  ;;  %v429_v39 = vrot.slane %v415_v32, %v379_v8  ;;  %s333_s14 = sadd.s32 7, %s998_s8 }
  0x1a   : > { %v1320_v11 = vld [vmem:[%s1313_s11] sm:$0x1]  ;;  %v1323_v12 = vld [vmem:[%s1313_s11 + $0x2] sm:$0x1]  ;;  %456 = vrot.lane.b32.xlu1 %v388_v16, %s1200_s12  ;;  %v1340_v26 = vld [vmem:[%s1313_s11 + $0x1] sm:$0x1]  ;;  %s334_s24 = scalar_lea.vmem %s1628_s1, %s333_s14 }
  0x1b   : > { %v358_v15 = vunpack.c.l.bf16 %v1320_v11  ;;  %v360_v17 = vunpack.c.l.bf16 %v1323_v12  ;;  %v359_v28 = vunpack.c.l.bf16 %v1340_v26  ;;  %v391_v29 = vrot.slane %v388_v16, 1  ;;  %v1352_v35 = vld [vmem:[%s1313_s11 + $0x4] sm:$0x1]  ;;  %v1355_v36 = vld [vmem:[%s1313_s11 + $0x3] sm:$0x1]  ;;  %s304_s30 = scalar_lea.vmem [#allocation2], %s997_s29 }
  0x1c   : > { %484 = vrot.lane.b32.xlu0 %v422_v14, %s1200_s12  ;;  %v392_v31 = vrot.slane %v387_v27, 1  ;;  %v433_v34 = vrot.slane %v430_v20, 1  ;;  %v1358_v37 = vld [vmem:[%s1313_s11 + $0x5] sm:$0x1]  ;;  %v389_v38 = vcombine.high %v387_v27, %v387_v27  ;;  %v362_v40 = vunpack.c.l.bf16 %v1352_v35  ;;  %v1380_v52 = vld [vmem:[%s1313_s11 + $0x6] sm:$0x1] }
  0x1d   : > { %v402_v18 = vmul.f32 %v380_v13, %v358_v15  ;;  %v404_v21 = vmul.f32 %v388_v16, %v360_v17  ;;  %v403_v30 = vmul.f32 %v390_v22, %v359_v28  ;;  %v361_v41 = vunpack.c.l.bf16 %v1355_v36  ;;  %v1384_v53 = vld [vmem:[%s1313_s11 + $0x7] sm:$0x1]  ;;  %s901_s6 = sshll.u32 %s304_s30, 4  ;;  %s1204_s11 = smov [#allocation2]   ;;  %s1577_s6 = int_to_ptr.vmem [resolvable:$true] %s901_s6 }
  0x1e   : > { %486 = vrot.lane.b32.xlu1 %v432_v19, %s1200_s12  ;;  %v363_v42 = vunpack.c.l.bf16 %v1358_v37  ;;  %v434_v43 = vrot.slane %v429_v39, 1  ;;  %v393_v44 = vrot.slane %v389_v38, 1  ;;  %v406_v45 = vmul.f32 %v387_v27, %v362_v40  ;;  %s1119_s10 = scalar_lea.vmem %s1577_s6, 128 }
  0x1f   : > { %v1334_v24 = vadd.f32 %v422_v14, %v402_v18  ;;  %v1336_v25 = vadd.f32 %v430_v20, %v404_v21  ;;  %v1348_v33 = vadd.f32 %v432_v19, %v403_v30  ;;  %v405_v46 = vmul.f32 %v391_v29, %v361_v41  ;;  %p1120_p12 = scmp.ne.s32.totalorder %s1577_s6, %s1119_s10 }
  0x20   : > { %454 = vrot.lane.b32.xlu0 %v390_v22, %s1200_s12  ;;  %v407_v47 = vmul.f32 %v392_v31, %v363_v42  ;;  %v431_v48 = vcombine.high %v429_v39, %v429_v39  ;;  %v1373_v49 = vadd.f32 %v429_v39, %v406_v45  ;;  %v364_v54 = vunpack.c.l.bf16 %v1380_v52 }
  0x21   : > { %v1375_v50 = vadd.f32 %v433_v34, %v405_v46  ;;  %v365_v57 = vunpack.c.l.bf16 %v1384_v53  ;;  %v524_v8 = vmin.f32 %v1334_v24, 0.0  ;;  %v526_v13 = vmin.f32 %v1336_v25, 0.0  ;;  %p1121_p13 = pnand %p1120_p12, %p1272_p4 }
  0x22   : > { %488 = vrot.lane.b32.xlu1 %v430_v20, %s1200_s12  ;;  %v1377_v51 = vadd.f32 %v434_v43, %v407_v47  ;;  %v435_v55 = vrot.slane %v431_v48, 1  ;;  %v408_v56 = vmul.f32 %v389_v38, %v364_v54  ;;  %v525_v20 = vmin.f32 %v1348_v33, 0.0 }
  0x23   : > { %v409_v59 = vmul.f32 %v393_v44, %v365_v57  ;;  %v532_v14 = vmul.f32 1.442695, %v524_v8  ;;  %v536_v18 = vmul.f32 1.442695, %v526_v13  ;;  %v528_v22 = vmin.f32 %v1373_v49, 0.0  ;;  %p1122_p0 = pneg %p1121_p13 }
  0x24   : > { %460 = vrot.lane.b32.xlu0 %v387_v27, %s1200_s12  ;;  %v1392_v58 = vadd.f32 %v431_v48, %v408_v56  ;;  %vm516_vm0 = vcmp.gt.f32.partialorder %v1334_v24, 0.0  ;;  %vm518_vm1 = vcmp.gt.f32.partialorder %v1336_v25, 0.0  ;;  %vm517_vm2 = vcmp.gt.f32.partialorder %v1348_v33, 0.0 }
  0x25   : > { %v1397_v60 = vadd.f32 %v435_v55, %v409_v59  ;;  %1085 = vpow2.f32 %v532_v14  ;;  %vm520_vm3 = vcmp.gt.f32.partialorder %v1373_v49, 0.0  ;;  %vm519_vm5 = vcmp.gt.f32.partialorder %v1375_v50, 0.0 }
  0x26   : > { %458 = vrot.lane.b32.xlu1 %v391_v29, %s1200_s12  ;;  %1087 = vpow2.f32 %v536_v18  ;;  %v530_v59 = vmin.f32 %v1392_v58, 0.0  ;;  %vm521_vm7 = vcmp.gt.f32.partialorder %v1377_v51, 0.0  ;;  %vm522_vm8 = vcmp.gt.f32.partialorder %v1392_v58, 0.0 }
  0x27   : > { %v531_v62 = vmin.f32 %v1397_v60, 0.0 }
  0x28   : > { %462 = vrot.lane.b32.xlu0 %v392_v31, %s1200_s12  ;;  %v534_v31 = vmul.f32 1.442695, %v525_v20  ;;  %v544_v8 = vmul.f32 1.442695, %v530_v59 }
  0x2a   : > { %490 = vrot.lane.b32.xlu1 %v433_v34, %s1200_s12  ;;  %1089 = vpow2.f32 %v534_v31 }
  0x2c   : > { %464 = vrot.lane.b32.xlu0 %v389_v38, %s1200_s12  ;;  %v540_v38 = vmul.f32 1.442695, %v528_v22 }
  0x2e   : > { %492 = vrot.lane.b32.xlu1 %v429_v39, %s1200_s12  ;;  %v529_v39 = vmin.f32 %v1377_v51, 0.0  ;;  %1091 = vpow2.f32 %v540_v38 }
  0x30   : > { %466 = vrot.lane.b32.xlu0 %v393_v44, %s1200_s12  ;;  %v542_v46 = vmul.f32 1.442695, %v529_v39 }
  0x32   : > { %494 = vrot.lane.b32.xlu1 %v434_v43, %s1200_s12 }
  0x34   : > { %496 = vrot.lane.b32.xlu0 %v431_v48, %s1200_s12 }
  0x36   : > { %498 = vrot.lane.b32.xlu1 %v435_v55, %s1200_s12  ;;  %v1086_v55 = vpop.eup %1085 }
  0x37   : > { %v1088_v63 = vpop.eup %1087 }
  0x3a   : > { %621 = vrot.lane.b32.xlu1 %v620_v1, %s1200_s12 }
  0x8a   : > { %v453_v5 = vpop.permute.xlu0 %452 }
  0x8b   : > { %v476_v9 = vmul.f32 %v453_v5, %v358_v15  ;;  %v527_v15 = vmin.f32 %v1375_v50, 0.0  ;;  %v1000_v5 = vadd.f32 -1.0, %v1086_v55 }
  0x8c   : > { %v457_v10 = vpop.permute.xlu1 %456 }
  0x8d   : > { %v478_v23 = vmul.f32 %v457_v10, %v360_v17  ;;  %v538_v26 = vmul.f32 1.442695, %v527_v15  ;;  %v1002_v10 = vadd.f32 -1.0, %v1088_v63  ;;  %v1442_v20 = vsel %vm516_vm0, %v1334_v24, %v1000_v5 }
  0x8e   : > { %v485_v16 = vpop.permute.xlu0 %484  ;;  %v728_v37 = vrot.slane %v1442_v20, %v1304_v7 }
  0x8f   : > { %v1411_v19 = vadd.f32 %v485_v16, %v476_v9  ;;  %1093 = vpow2.f32 %v538_v26  ;;  %v546_v16 = vmul.f32 1.442695, %v531_v62 }
  0x90   : > { %v487_v4 = vpop.permute.xlu1 %486 }
  0x91   : > { %v572_v27 = vmin.f32 %v1411_v19, 0.0  ;;  %vm564_vm10 = vcmp.gt.f32.partialorder %v1411_v19, 0.0 }
  0x92   : > { %v455_v21 = vpop.permute.xlu0 %454 }
  0x93   : > { %v477_v11 = vmul.f32 %v455_v21, %v359_v28  ;;  %v580_v28 = vmul.f32 1.442695, %v572_v27 }
  0x94   : > { %v489_v29 = vpop.permute.xlu1 %488 }
  0x95   : > { %v1421_v30 = vadd.f32 %v487_v4, %v477_v11  ;;  %v1423_v32 = vadd.f32 %v489_v29, %v478_v23  ;;  %1095 = vpow2.f32 %v580_v28  ;;  %v1090_v4 = vpop.eup %1089  ;;  %v1449_v11 = vsel %vm518_vm1, %v1336_v25, %v1002_v10 }
  0x96   : > { %v461_v34 = vpop.permute.xlu0 %460  ;;  %v1092_v21 = vpop.eup %1091  ;;  %vm523_vm1 = vcmp.gt.f32.partialorder %v1397_v60, 0.0 }
  0x97   : > { %v573_v12 = vmin.f32 %v1421_v30, 0.0  ;;  %v574_v17 = vmin.f32 %v1423_v32, 0.0  ;;  %v480_v36 = vmul.f32 %v461_v34, %v362_v40  ;;  %v1004_v38 = vadd.f32 -1.0, %v1092_v21 }
  0x98   : > { %v459_v43 = vpop.permute.xlu1 %458  ;;  %vm565_vm12 = vcmp.gt.f32.partialorder %v1421_v30, 0.0  ;;  %vm566_vm14 = vcmp.gt.f32.partialorder %v1423_v32, 0.0 }
  0x99   : > { %v582_v44 = vmul.f32 1.442695, %v573_v12  ;;  %v584_v47 = vmul.f32 1.442695, %v574_v17  ;;  %v479_v48 = vmul.f32 %v459_v43, %v361_v41  ;;  %v1094_v23 = vpop.eup %1093  ;;  %v736_v17 = vrot.slane %v1449_v11, %v1304_v7 }
  0x9a   : > { %v463_v45 = vpop.permute.xlu0 %462  ;;  %v1003_v26 = vadd.f32 -1.0, %v1094_v23 }
  0x9b   : > { %1097 = vpow2.f32 %v582_v44  ;;  %v481_v35 = vmul.f32 %v463_v45, %v363_v42  ;;  %v1001_v42 = vadd.f32 -1.0, %v1090_v4 }
  0x9c   : > { %v491_v56 = vpop.permute.xlu1 %490  ;;  %1099 = vpow2.f32 %v542_v46 }
  0x9d   : > { %v1431_v61 = vadd.f32 %v491_v56, %v479_v48  ;;  %1101 = vpow2.f32 %v584_v47  ;;  %v557_v44 = vsel %vm517_vm2, %v1348_v33, %v1001_v42  ;;  %v560_v47 = vsel %vm520_vm3, %v1373_v49, %v1004_v38 }
  0x9e   : > { %v465_v1 = vpop.permute.xlu0 %464  ;;  %v559_v33 = vsel %vm519_vm5, %v1375_v50, %v1003_v26  ;;  %v732_v49 = vrot.slane %v557_v44, %v1304_v7  ;;  %v744_v50 = vrot.slane %v560_v47, %v1304_v7  ;;  %vm698_vm2 = vcmask 1046534  }
  0x9f   : > { %v575_v41 = vmin.f32 %v1431_v61, 0.0  ;;  %v1096_v24 = vpop.eup %1095  ;;  %v482_v29 = vmul.f32 %v465_v1, %v364_v54  ;;  %vm567_vm15 = vcmp.gt.f32.partialorder %v1431_v61, 0.0  ;;  %vm700_vm5 = vcmask 1047559  }
  0xa0   : > { %v493_v9 = vpop.permute.xlu1 %492  ;;  %v1008_v43 = vadd.f32 -1.0, %v1096_v24  ;;  %v757_v4 = vsel %vm688_vm4, %v732_v49, %v728_v37 }
  0xa1   : > { %v586_v13 = vmul.f32 1.442695, %v575_v41  ;;  %v1438_v14 = vadd.f32 %v493_v9, %v480_v36  ;;  %v740_v9 = vrot.slane %v559_v33, %v1304_v7 }
  0xa2   : > { %v467_v18 = vpop.permute.xlu0 %466  ;;  %v604_v63 = vsel %vm564_vm10, %v1411_v19, %v1008_v43 }
  0xa3   : > { %1103 = vpow2.f32 %v586_v13  ;;  %v576_v40 = vmin.f32 %v1438_v14, 0.0  ;;  %v483_v25 = vmul.f32 %v467_v18, %v365_v57  ;;  %v659_v19 = vrot.slane %v604_v63, %v1304_v7 }
  0xa4   : > { %1105 = vpow2.f32 %v544_v8  ;;  %v495_v22 = vpop.permute.xlu1 %494  ;;  %vm568_vm0 = vcmp.gt.f32.partialorder %v1438_v14, 0.0 }
  0xa5   : > { %v588_v15 = vmul.f32 1.442695, %v576_v40  ;;  %1107 = vpow2.f32 %v546_v16  ;;  %v1451_v27 = vadd.f32 %v495_v22, %v481_v35  ;;  %v1098_v34 = vpop.eup %1097 }
  0xa6   : > { %v497_v31 = vpop.permute.xlu0 %496  ;;  %v1100_v12 = vpop.eup %1099  ;;  %v1009_v45 = vadd.f32 -1.0, %v1098_v34 }
  0xa7   : > { %1109 = vpow2.f32 %v588_v15  ;;  %v577_v39 = vmin.f32 %v1451_v27, 0.0  ;;  %v1464_v28 = vadd.f32 %v497_v31, %v482_v29  ;;  %v1102_v54 = vpop.eup %1101  ;;  %v1005_v48 = vadd.f32 -1.0, %v1100_v12 }
  0xa8   : > { %v499_v52 = vpop.permute.xlu1 %498  ;;  %v1010_v56 = vadd.f32 -1.0, %v1102_v54  ;;  %v605_v36 = vsel %vm565_vm12, %v1421_v30, %v1009_v45  ;;  %vm569_vm3 = vcmp.gt.f32.partialorder %v1451_v27, 0.0 }
  0xa9   : > { %v590_v53 = vmul.f32 1.442695, %v577_v39  ;;  %v1467_v57 = vadd.f32 %v499_v52, %v483_v25  ;;  %v578_v46 = vmin.f32 %v1464_v28, 0.0  ;;  %v561_v13 = vsel %vm521_vm7, %v1377_v51, %v1005_v48 }
  0xaa   : > { %v606_v10 = vsel %vm566_vm14, %v1423_v32, %v1010_v56  ;;  %v663_v16 = vrot.slane %v605_v36, %v1304_v7  ;;  %v758_v32 = vsel %vm690_vm6, %v736_v17, %v757_v4  ;;  %v748_v22 = vrot.slane %v561_v13, %v1304_v7 }
  0xab   : > { %1111 = vpow2.f32 %v590_v53  ;;  %v579_v55 = vmin.f32 %v1467_v57, 0.0  ;;  %v592_v59 = vmul.f32 1.442695, %v578_v46  ;;  %v667_v21 = vrot.slane %v606_v10, %v1304_v7 }
  0xac   : > { %v759_v15 = vsel %vm692_vm9, %v740_v9, %v758_v32  ;;  %v689_v37 = vsel %vm688_vm4, %v663_v16, %v659_v19  ;;  %vm570_vm4 = vcmp.gt.f32.partialorder %v1464_v28, 0.0 }
  0xad   : > { %v1104_v62 = vpop.eup %1103  ;;  %v594_v1 = vmul.f32 1.442695, %v579_v55  ;;  %1113 = vpow2.f32 %v592_v59  ;;  %v760_v31 = vsel %vm694_vm11, %v744_v50, %v759_v15  ;;  %v691_v25 = vsel %vm690_vm6, %v667_v21, %v689_v37  ;;  %v622_v59 = vpop.permute.xlu1 %621 }
  0xae   : > { %v1106_v5 = vpop.eup %1105  ;;  %v1011_v41 = vadd.f32 -1.0, %v1104_v62  ;;  %vm571_vm6 = vcmp.gt.f32.partialorder %v1467_v57, 0.0 }
  0xaf   : > { %v1108_v8 = vpop.eup %1107  ;;  %1115 = vpow2.f32 %v594_v1  ;;  %v1006_v18 = vadd.f32 -1.0, %v1106_v5  ;;  %v1203_v5 = vmov 1966171168  }
  0xb0   : > { %v607_v20 = vsel %vm567_vm15, %v1431_v61, %v1011_v41  ;;  %v1007_v40 = vadd.f32 -1.0, %v1108_v8  ;;  %v773_v36 = vunpack.c.l.s4 %v1203_v5 }
  0xb1   : > { %v1110_v30 = vpop.eup %1109  ;;  %v562_v51 = vsel %vm522_vm8, %v1392_v58, %v1006_v18  ;;  %v671_v42 = vrot.slane %v607_v20, %v1304_v7  ;;  %vm647_vm8 = vcmp.eq.s32.totalorder %v1288_v3, 0 }
  0xb2   : > { %v1012_v35 = vadd.f32 -1.0, %v1110_v30  ;;  %v563_v11 = vsel %vm523_vm1, %v1397_v60, %v1007_v40  ;;  %v752_v61 = vrot.slane %v562_v51, %v1304_v7  ;;  %v774_v50 = vunpack.c.0.s8 %v773_v36 }
  0xb3   : > { %v756_v29 = vrot.slane %v563_v11, %v1304_v7  ;;  %v693_v26 = vsel %vm692_vm9, %v671_v42, %v691_v25  ;;  %vm876_vm9 = vcmask 57344  }
  0xb4   : > { %v608_v23 = vsel %vm568_vm0, %v1438_v14, %v1012_v35  ;;  %v761_v14 = vsel %vm696_vm13, %v748_v22, %v760_v31  ;;  %v777_v30 = vsub.s32 %v774_v50, %v1288_v3 }
  0xb5   : > { %v1112_v24 = vpop.eup %1111  ;;  %v675_v58 = vrot.slane %v608_v23, %v1304_v7  ;;  %v762_v60 = vsel %vm698_vm2, %v752_v61, %v761_v14 }
  0xb6   : > { %v1013_v34 = vadd.f32 -1.0, %v1112_v24  ;;  %v763_v12 = vsel %vm700_vm5, %v756_v29, %v762_v60 }
  0xb7   : > { %v1114_v38 = vpop.eup %1113  ;;  %v695_v53 = vsel %vm694_vm11, %v675_v58, %v693_v26 }
  0xb8   : > { %v609_v39 = vsel %vm569_vm3, %v1451_v27, %v1013_v34  ;;  %v1014_v54 = vadd.f32 -1.0, %v1114_v38 }
  0xb9   : > { %v1116_v17 = vpop.eup %1115  ;;  %v679_v52 = vrot.slane %v609_v39, %v1304_v7 }
  0xba   : > { %v1015_v43 = vadd.f32 -1.0, %v1116_v17  ;;  %v610_v44 = vsel %vm570_vm4, %v1464_v28, %v1014_v54 }
  0xbb   : > { %v697_v27 = vsel %vm696_vm13, %v679_v52, %v695_v53  ;;  %v683_v45 = vrot.slane %v610_v44, %v1304_v7 }
  0xbc   : > { %v611_v46 = vsel %vm571_vm6, %v1467_v57, %v1015_v43  ;;  %v612_v57 = vld [vmem:[%s334_s24] sm:$0x1] }
  0xbd   : > { %v687_v47 = vrot.slane %v611_v46, %v1304_v7  ;;  %v699_v48 = vsel %vm698_vm2, %v683_v45, %v697_v27  ;;  %v613_v33 = vunpack.c.l.bf16 %v612_v57 }
  0xbf   : > { %v701_v55 = vsel %vm700_vm5, %v687_v47, %v699_v48  ;;  %v624_v62 = vmul.f32 %v622_v59, %v613_v33 }
  0xc0   : > { %702 = vrot.lane.b32.xlu0 %v701_v55, %s1202_s13 }
  0xc4   : > { %632 = vrot.lane.b32.xlu0 %v631_v2, %s1200_s12 }
  0xc8   : > { %764 = vrot.lane.b32.xlu0 %v763_v12, %s1200_s12 }
 0x132   : > { %v703_v28 = vpop.permute.xlu0 %702 }
 0x133   : > { %v705_v56 = vrot.slane %v703_v28, 7 }
 0x135   : > { %711 = vrot.lane.b32.xlu1 %v705_v56, %s1200_s12  ;;  %s1123_s12 = sshll.u32 %s1204_s11, 4  ;;  %s1124_s12 = int_to_ptr.vmem [resolvable:$false] %s1123_s12 }
 0x136   : > { %v633_v63 = vpop.permute.xlu0 %632  ;;  %p1126_p1 = scmp.lt.s32.totalorder %s1577_s6, %s1124_s12 }
 0x137   : > { %v635_v49 = vadd.f32 %v633_v63, %v624_v62 }
 0x139   : > { %v637_v6 = vmin.f32 %v635_v49, 0.0  ;;  %vm636_vm7 = vcmp.gt.f32.partialorder %v635_v49, 0.0 }
 0x13a   : > { %v765_v19 = vpop.permute.xlu0 %764 }
 0x13b   : > { %v638_v0 = vmul.f32 1.442695, %v637_v6 }
 0x13d   : > { %1117 = vpow2.f32 %v638_v0 }
 0x147   : > { %v1118_v2 = vpop.eup %1117 }
 0x148   : > { %v1016_v1 = vadd.f32 -1.0, %v1118_v2 }
 0x14a   : > { %v641_v41 = vsel %vm636_vm7, %v635_v49, %v1016_v1 }
 0x14b   : > { %v709_v8 = vrot.slane %v641_v41, %v1304_v7 }
 0x1a7   : > { %v712_v9 = vpop.permute.xlu1 %711 }
 0x1a8   : > { %v714_v10 = vsel %vm647_vm8, %v709_v8, %v712_v9 }
 0x1a9   : > { %v716_v13 = vsel %vm647_vm8, -1e+30, %v714_v10 }
 0x1aa   : > { %v767_v16 = vmax.f32 %v716_v13, %v765_v19 }
 0x1ac   : > { %v769_v18 = vmax.f32 %v767_v16, %v701_v55 }
 0x1ae   : > { %v771_v4 = vcombine.high %v769_v18, %v769_v18  ;;  %v778_v20 = vrot.slane %v769_v18, %v777_v30 }
 0x1b0   : > { %v785_v35 = vrot.slane %v771_v4, %v777_v30  ;;  %v786_v40 = vcombine.high %v778_v20, %v778_v20  ;;  %v794_v32 = vrot.slane %v778_v20, %v777_v30 }
 0x1b2   : > { %v823_v21 = vrot.slane %v794_v32, %v1304_v7  ;;  %v808_v51 = vrot.slane %v786_v40, %v777_v30  ;;  %v816_v22 = vcombine.high %v794_v32, %v794_v32  ;;  %v787_v61 = vcombine.high %v785_v35, %v785_v35 }
 0x1b3   : > { %v801_v15 = vrot.slane %v785_v35, %v777_v30 }
 0x1b4   : > { %852 = vrot.lane.b32.xlu1 %v823_v21, %s1202_s13  ;;  %v827_v23 = vrot.slane %v808_v51, %v1304_v7  ;;  %v818_v11 = vcombine.high %v808_v51, %v808_v51  ;;  %v831_v3 = vrot.slane %v816_v22, %v1304_v7  ;;  %v815_v37 = vrot.slane %v787_v61, %v777_v30 }
 0x1b5   : > { %v839_v42 = vrot.slane %v801_v15, %v1304_v7  ;;  %v817_v29 = vcombine.high %v801_v15, %v801_v15 }
 0x1b6   : > { %854 = vrot.lane.b32.xlu0 %v827_v23, %s1202_s13  ;;  %v835_v24 = vrot.slane %v818_v11, %v1304_v7  ;;  %v843_v31 = vrot.slane %v815_v37, %v1304_v7  ;;  %v819_v58 = vcombine.high %v815_v37, %v815_v37 }
 0x1b7   : > { %v847_v34 = vrot.slane %v817_v29, %v1304_v7 }
 0x1b8   : > { %856 = vrot.lane.b32.xlu1 %v831_v3, %s1202_s13  ;;  %v851_v14 = vrot.slane %v819_v58, %v1304_v7 }
 0x1ba   : > { %858 = vrot.lane.b32.xlu0 %v835_v24, %s1202_s13 }
 0x1bc   : > { %860 = vrot.lane.b32.xlu1 %v839_v42, %s1202_s13 }
 0x1be   : > { %862 = vrot.lane.b32.xlu0 %v843_v31, %s1202_s13 }
 0x1c0   : > { %864 = vrot.lane.b32.xlu1 %v847_v34, %s1202_s13 }
 0x1c2   : > { %866 = vrot.lane.b32.xlu0 %v851_v14, %s1202_s13  ;;  %s1125_s13 = scalar_lea.vmem %s1124_s12, 256 }
 0x1c3   : > { %p1127_p2 = scmp.lt.s32.totalorder %s1125_s13, %s1119_s10 }
 0x1c5   : > { %p1128_p3 = por %p1127_p2, %p1126_p1 }
 0x1c7   : > { %p1129_p5 = pnand %p1128_p3, %p1122_p0 }
 0x226   : > { %v853_v60 = vpop.permute.xlu1 %852 }
 0x227   : > { %877 = vst.msk [vmem:[%s304_s30] sm:$0x1] %vm876_vm9, %v853_v60 }
 0x228   : > { %v855_v38 = vpop.permute.xlu0 %854 }
 0x229   : > { %878 = vst.msk [vmem:[%s304_s30 + $0x1] sm:$0x1] %vm876_vm9, %v855_v38 }
 0x22a   : > { %v857_v25 = vpop.permute.xlu1 %856 }
 0x22b   : > { %879 = vst.msk [vmem:[%s304_s30 + $0x2] sm:$0x1] %vm876_vm9, %v857_v25 }
 0x22c   : > { %v859_v39 = vpop.permute.xlu0 %858 }
 0x22d   : > { %880 = vst.msk [vmem:[%s304_s30 + $0x3] sm:$0x1] %vm876_vm9, %v859_v39 }
 0x22e   : > { %v861_v7 = vpop.permute.xlu1 %860 }
 0x22f   : > { %881 = vst.msk [vmem:[%s304_s30 + $0x4] sm:$0x1] %vm876_vm9, %v861_v7 }
 0x230   : > { %v863_v12 = vpop.permute.xlu0 %862 }
 0x231   : > { %882 = vst.msk [vmem:[%s304_s30 + $0x5] sm:$0x1] %vm876_vm9, %v863_v12 }
 0x232   : > { %v865_v17 = vpop.permute.xlu1 %864 }
 0x233   : > { %883 = vst.msk [vmem:[%s304_s30 + $0x6] sm:$0x1] %vm876_vm9, %v865_v17 }
 0x234   : > { %v867_v26 = vpop.permute.xlu0 %866 }
 0x235   : > { %884 = vst.msk [vmem:[%s304_s30 + $0x7] sm:$0x1] %vm876_vm9, %v867_v26 }
 0x236   : > { %1132 = shalt.err (!%p1129_p5)
}
 0x237   : > { %s1133_s14 = scalar_lea.hbm %s1575_s9, 128  ;;  %s1137_s24 = scalar_lea.hbm %s1631_s4, 256 }
 0x238   : > { %p1134_p6 = scmp.ne.s32.totalorder %s1575_s9, %s1133_s14  ;;  %p1138_p10 = scmp.lt.u32.totalorder %s1575_s9, %s1631_s4 }
 0x239   : > { %p1139_p11 = scmp.lt.u32.totalorder %s1137_s24, %s1133_s14  ;;  %p1141_p13 = scmp.lt.u32.totalorder %s1133_s14, %s1575_s9 }
 0x23a   : > { %p1135_p7 = pnand %p1134_p6, %p1272_p4 }
 0x23b   : > { %p1140_p12 = por %p1139_p11, %p1138_p10 }
 0x23c   : > { %p1136_p9 = pneg %p1135_p7 }
 0x23d   : > { %p1142_p0 = por %p1141_p13, %p1140_p12 }
 0x23f   : > { %p1143_p1 = pnand %p1142_p0, %p1136_p9 }
 0x241   : > { %1146 = shalt.err (!%p1143_p1)
}
 0x242   : > { %s1205_s30 = smov 16   ;;  %s1206_s5 = smov 1  }
 0x243   : > { %1023 = dma.vmem_to_hbm [thread:$0]  (%p1272_p4), %s1577_s6, 128, %s1575_s9, %s1581_s18, %s1205_s30, %s1205_s30, %s1206_s5  }
 0x244 PF: > { %p1029_p2 = scmp.ge.s32.totalorder %s1197_s20, 2  ;;  %s916_s7 = sand.u32 1, %s1177_s15  }
 0x245   : > { %s917_s8 = scalar_lea.sflag [#allocation3], %s916_s7 }
 0x246   : > { %p1026_p3 = pnand %p1029_p2, %p1279_p8 }
 0x248   : > { %1172 = dma.done.wait (!%p1026_p3), %s917_s8, 128  }
 0x249   : > { %1174 = vsyncadd (!%p1026_p3), %s917_s8, 4294967168  ;;  %s17_s20 = sadd.s32 1, %s1197_s20   ;;  %s1634_s15 = smov %s1181_s16 }
 0x24a   : > { %p14_p5 = scmp.ge.s32.totalorder %s17_s20, 4   ;;  %s1635_s16 = smov %s1185_s17 }
 0x24b   : > { %s1636_s17 = smov %s1285_s28  ;;  %s1637_s18 = smov %s1193_s19 }
 0x24c   : > { %s1638_s19 = smov %s1640_s23  ;;  %16 = sbr.rel (!%p14_p5) target bundleno = 4 (0x4), region = 74 }
 0x253   :  { %922 = vsyncpa [#allocation3], 1 }
 0x254   :  { %924 = vsyncpa [#allocation3 + $0x1], 1 }

// kernel: conv_layer_forward.2
= control target key start
LH: loop header
LB: loop body
LE: loop exit
PB: predicated region body
PF: predicated region fallthrough
CT: control target
= control target key end

     0   :  { %s1509_s27 = smov 0   ;;  %s1511_s28 = smov 0   ;;  %s1688_s0 = inlined_call_operand.vmem [shape: bf16[2,8,1,16], index: 0, kind: input, shape index: {}, may-alias: {0,1,2}]   ;;  %s1689_s1 = inlined_call_operand.vmem [shape: bf16[2,8,1,16], index: 1, kind: input, shape index: {}, may-alias: {0,1,2}]   ;;  %s1690_s2 = inlined_call_operand.vmem [shape: bf16[2,8,1,16], index: 2, kind: input, shape index: {}, may-alias: {0,1,2}]   ;;  %s1691_s3 = inlined_call_operand.vmem [shape: bf16[16,16], index: 3, kind: input, shape index: {}]   ;;  %s1692_s4 = inlined_call_operand.vmem [shape: bf16[8,8], index: 4, kind: input, shape index: {}]   ;;  %s1693_s5 = inlined_call_operand.vmem [shape: bf16[8,8], index: 5, kind: input, shape index: {}]   ;;  %s1694_s6 = inlined_call_operand.vmem [shape: bf16[2,8,1,16], index: 6, kind: output, shape index: {0}]   ;;  %s1695_s7 = inlined_call_operand.vmem [shape: f32[2,1,8], index: 7, kind: output, shape index: {1}]   ;;  %s1696_s8 = inlined_call_operand.vmem [shape: f32[2,1,8], index: 8, kind: output, shape index: {2}]  }
   0x1   :  { %s1513_s29 = smov 0  }
   0x2 LB: > { %s31_s30 = sadd.s32 1, %s1453_s28  ;;  %p1339_p0 = scmp.ge.s32.totalorder %s1457_s29, 1  ;;  %s1457_s29 = sphi %s1513_s29, %s19_s29   ;;  %s1453_s28 = sphi %s1511_s28, %s1700_s28   ;;  %s1449_s27 = sphi %s1509_s27, %s1699_s27  }
   0x3   : > { %p33_p1 = scmp.ge.s32.totalorder %s31_s30, 2  ;;  %p427_p2 = scmp.lt.s32.totalorder %s1457_s29, 3 }
   0x5   : > { %s1702_s30 = smov (%p33_p1, %s31_s30), 0  ;;  %p428_p3 = pnand %p1339_p0, %p427_p2 }
   0x6   : > { %v1434_v0 = vld [vmem:[%s1691_s3] sm:$0xff] (!%p428_p3)   ;;  %v638_v1 = vlaneseq (!%p428_p3)  ;;  %v1459_v2 = vmov (!%p428_p3), 0.0   ;;  %p516_p4 = scmp.lt.s32.totalorder (!%p428_p3), %s1449_s27, 1  ;;  %vm1460_vm0 = vmmov (!%p428_p3), 0   ;;  %v1461_v3 = vmov (!%p428_p3), 1966171168  }
   0x7   : > { %431 = sbr.rel (%p428_p3) target bundleno = 522 (0x20a), region = 44  ;;  %1375 = vmatprep.subr.bf16.mxu0 (!%p428_p3), %v1459_v2  ;;  %1381 = vmatprep.subr.bf16.mxu1 (!%p428_p3), %v1459_v2  ;;  %v636_v4 = vunpack.c.l.s4 (!%p428_p3), %v1461_v3  ;;  %vm827_vm1 = vcmask (!%p428_p3), 1043456   ;;  %v820_v7 = vld [vmem:[%s1692_s4] sm:$0xf] (!%p428_p3)  ;;  %vm749_vm2 = vcmask (!%p428_p3), 1041409   ;;  %vm752_vm3 = vcmask (!%p428_p3), 1042434  }
   0x8   : > { %1376 = vmatpush3.bf16.msra.mxu0 (!%p428_p3), %v1434_v0  ;;  %1377 = vmatprep.mubr.msk.bf16.mxu0 (!%p428_p3), %vm1460_vm0, %v1459_v2  ;;  %v1534_v5 = vshrl.u32 (!%p428_p3), %v638_v1, 7  ;;  %v1548_v8 = vsel (!%p428_p3), %vm827_vm1, %v820_v7, 0  ;;  %vm755_vm4 = vcmask (!%p428_p3), 1043459   ;;  %vm758_vm5 = vcmask (!%p428_p3), 1044484   ;;  %v871_v46 = vld [vmem:[%s1693_s5] sm:$0xf] (!%p428_p3) }
   0x9   : > { %1387 = vmatprep.subr.bf16.mxu0 (!%p428_p3), %v1459_v2  ;;  %1383 = vmatprep.mubr.msk.bf16.mxu1 (!%p428_p3), %vm1460_vm0, %v1459_v2  ;;  %v637_v6 = vunpack.c.0.s8 (!%p428_p3), %v636_v4  ;;  %vm761_vm6 = vcmask (!%p428_p3), 1045509   ;;  %vm764_vm7 = vcmask (!%p428_p3), 1046534   ;;  %vm767_vm8 = vcmask (!%p428_p3), 1047559   ;;  %s1462_s23 = smov (!%p428_p3), 120   ;;  %s1463_s9 = smov (!%p428_p3), 8  }
   0xa   : > { %1382 = vmatpush3.bf16.msra.mxu1 (!%p428_p3), %v1548_v8  ;;  %vm776_vm9 = vcmask (!%p428_p3), 130048   ;;  %v875_v51 = vsel (!%p428_p3), %vm827_vm1, %v871_v46, 0  ;;  %vm823_vm10 = vcmask (!%p428_p3), 64512   ;;  %v1028_v0 = vsub.s32 (!%p428_p3), 0, %v1534_v5 }
   0xb   : > { %v1555_v9 = vsub.s32 (!%p428_p3), %v637_v6, %v1534_v5  ;;  %1393 = vmatprep.subr.bf16.mxu1 (!%p428_p3), %v1459_v2  ;;  %vm1031_vm11 = vcmp.eq.s32.totalorder (!%p428_p3), %v1534_v5, 7  ;;  %vm1126_vm12 = vcmask (!%p428_p3), 57344   ;;  %vm1024_vm13 = vcmp.eq.s32.totalorder (!%p428_p3), %v1534_v5, 0 }
   0xc   : > { %vm1136_vm14 = vcmask (!%p428_p3), 130112   ;;  %vm1095_vm15 = vcmask (!%p428_p3), 122880  }
   0xe   : > { %s1704_s27 = smov (!%p516_p4, %s1449_s27), 1 }
   0xf   : > { %s1545_s13 = sshll.u32 %s1704_s27, 3  ;;  %s1602_s12 = scalar_lea.vmem %s1695_s7, %s1704_s27 }
  0x10   : > { %s522_s16 = scalar_lea.vmem %s1688_s0, %s1545_s13  ;;  %s543_s17 = sadd.s32 7, %s1545_s13  ;;  %1127 = vst.msk [vmem:[%s1602_s12] sm:$0x1] %vm1126_vm12, %v1459_v2 }
  0x11   : > { %v1344_v10 = vld.sshfl [vmem:[%s522_s16] sm:$0x1 pattern:$0x75316420]  ;;  %s544_s20 = scalar_lea.vmem %s1689_s1, %s543_s17  ;;  %s579_s26 = scalar_lea.vmem %s1690_s2, %s1545_s13 }
  0x12   : > { %v1345_v11 = vld.sshfl [vmem:[%s522_s16 + $0x1] sm:$0x1 pattern:$0x75316420]  ;;  %v641_v12 = vrot.slane %v1344_v10, %v1555_v9  ;;  %v978_v53 = vld [vmem:[%s579_s26] sm:$0x1]  ;;  %s1626_s19 = scalar_lea.vmem %s1694_s6, %s1545_s13 }
  0x13   : > { %v1346_v13 = vld.sshfl [vmem:[%s522_s16 + $0x2] sm:$0x1 pattern:$0x75316420]  ;;  %v655_v14 = vrot.slane %v1345_v11, %v1555_v9  ;;  %v1107_v46 = vld [vmem:[%s1626_s19 + $0x3] sm:$0x1] }
  0x14   : > { %v1347_v15 = vld.sshfl [vmem:[%s522_s16 + $0x3] sm:$0x1 pattern:$0x75316420]  ;;  %v669_v16 = vrot.slane %v1346_v13, %v1555_v9  ;;  %v740_v19 = vunpack.c.l.b16 %v641_v12 }
  0x15   : > { %v1348_v17 = vld.sshfl [vmem:[%s522_s16 + $0x4] sm:$0x1 pattern:$0x75316420]  ;;  %v683_v18 = vrot.slane %v1347_v15, %v1555_v9  ;;  %v741_v20 = vunpack.c.l.b16 %v655_v14 }
  0x16   : > { %v1349_v21 = vld.sshfl [vmem:[%s522_s16 + $0x5] sm:$0x1 pattern:$0x75316420]  ;;  %v697_v22 = vrot.slane %v1348_v17, %v1555_v9  ;;  %v742_v23 = vunpack.c.l.b16 %v669_v16 }
  0x17   : > { %v1350_v24 = vld.sshfl [vmem:[%s522_s16 + $0x6] sm:$0x1 pattern:$0x75316420]  ;;  %v711_v25 = vrot.slane %v1349_v21, %v1555_v9  ;;  %v743_v26 = vunpack.c.l.b16 %v683_v18  ;;  %v748_v27 = vrot.slane %v741_v20, 7 }
  0x18   : > { %v1351_v28 = vld.sshfl [vmem:[%s522_s16 + $0x7] sm:$0x1 pattern:$0x75316420]  ;;  %v725_v29 = vrot.slane %v1350_v24, %v1555_v9  ;;  %v744_v30 = vunpack.c.l.b16 %v697_v22  ;;  %v751_v31 = vrot.slane %v742_v23, 6  ;;  %s1616_s16 = scalar_lea.vmem %s1696_s8, %s1704_s27 }
  0x19   : > { %v739_v32 = vrot.slane %v1351_v28, %v1555_v9  ;;  %v745_v33 = vunpack.c.l.b16 %v711_v25  ;;  %v750_v34 = vsel %vm749_vm2, %v748_v27, %v740_v19  ;;  %v754_v35 = vrot.slane %v743_v26, 5  ;;  %v1356_v49 = vld.sshfl [vmem:[%s544_s20] sm:$0x1 pattern:$0x75316420] }
  0x1a   : > { %v746_v36 = vunpack.c.l.b16 %v725_v29  ;;  %v753_v37 = vsel %vm752_vm3, %v751_v31, %v750_v34  ;;  %v757_v38 = vrot.slane %v744_v30, 4  ;;  %v932_v52 = vrot.slane %v1356_v49, %v1555_v9  ;;  %1128 = vst.msk [vmem:[%s1616_s16] sm:$0x1] %vm1126_vm12, %v1459_v2 }
  0x1b   : > { %v747_v39 = vunpack.c.l.b16 %v739_v32  ;;  %v756_v40 = vsel %vm755_vm4, %v754_v35, %v753_v37  ;;  %v760_v41 = vrot.slane %v745_v33, 3  ;;  %v1098_v37 = vld [vmem:[%s1626_s19] sm:$0x1] }
  0x1c   : > { %v759_v42 = vsel %vm758_vm5, %v757_v38, %v756_v40  ;;  %v763_v43 = vrot.slane %v746_v36, 2 }
  0x1d   : > { %v762_v44 = vsel %vm761_vm6, %v760_v41, %v759_v42  ;;  %v766_v45 = vrot.slane %v747_v39, 1  ;;  %v1101_v42 = vld [vmem:[%s1626_s19 + $0x1] sm:$0x1] }
  0x1e   : > { %v765_v47 = vsel %vm764_vm7, %v763_v43, %v762_v44 }
  0x1f   : > { %v768_v48 = vsel %vm767_vm8, %v766_v45, %v765_v47  ;;  %v1104_v45 = vld [vmem:[%s1626_s19 + $0x2] sm:$0x1]  ;;  %v1110_v47 = vld [vmem:[%s1626_s19 + $0x4] sm:$0x1] }
  0x20   : > { %v769_v50 = vpack.c.b16 %v768_v48, %v768_v48 }
  0x22   : > { %821 = vrot.lane.b32.xlu0 %v769_v50, %s1462_s23  ;;  %1378 = vmatmul.mubr.msk.bf16.vlgmr.msra.gmra.mrb[0].mxu0 %vm776_vm9, %v769_v50 }
  0x23   : > { %1388 = vmatpush3.bf16.msra.mxu0 %v875_v51  ;;  %1389 = vmatprep.mubr.msk.bf16.mxu0 %vm1460_vm0, %v1459_v2 }
  0x24   : > { %1399 = vmatprep.subr.bf16.mxu0 %v1459_v2 }
  0x26   : > { %933 = vrot.lane.b32.xlu0 %v932_v52, %s1462_s23  ;;  %v1113_v52 = vld [vmem:[%s1626_s19 + $0x5] sm:$0x1] }
  0x2a   : > { %1390 = vmatmul.mubr.msk.bf16.vlgmr.msra.gmra.mrb[4].mxu0 %vm823_vm10, %v769_v50 }
  0x2b   : > { %1400 = vmatpush3.bf16.msra.mxu0 %v875_v51  ;;  %1401 = vmatprep.mubr.msk.bf16.mxu0 %vm1460_vm0, %v1459_v2 }
  0x32   : > { %1402 = vmatmul.mubr.msk.bf16.vlgmr.msra.gmra.mrb[8].mxu0 %vm823_vm10, %v978_v53  ;;  %v1116_v53 = vld [vmem:[%s1626_s19 + $0x6] sm:$0x1] }
  0x94   : > { %v822_v54 = vpop.permute.xlu0 %821 }
  0x95   : > { %1384 = vmatmul.mubr.msk.bf16.vlgmr.msra.gmra.mrb[0].mxu1 %vm823_vm10, %v822_v54 }
  0x96   : > { %1394 = vmatpush3.bf16.msra.mxu1 %v1548_v8  ;;  %1395 = vmatprep.mubr.msk.bf16.mxu1 %vm1460_vm0, %v1459_v2  ;;  %vm1096_vm0 = vsmask.f32 256 }
  0x97   : > { %vm1629_vm1 = vmand %vm1095_vm15, %vm1096_vm0 }
  0x98   : > { %v934_v55 = vpop.permute.xlu0 %933 }
  0x9d   : > { %1396 = vmatmul.mubr.msk.bf16.vlgmr.msra.gmra.mrb[4].mxu1 %vm823_vm10, %v934_v55 }
  0xf5   : > { %v814_v56 = vpop.f32.mrb[0].mxu0 }
  0xf6   : > { %v1379_v57 = vpop.f32.mrb[1].mxu0 }
  0xf7   : > { %v817_v58 = vpop.f32.mrb[2].mxu0 }
  0xf8   : > { %v1380_v59 = vpop.f32.mrb[3].mxu0 }
  0xfd   : > { %v911_v60 = vpop.f32.mrb[4].mxu0 }
  0xfe   : > { %v1391_v61 = vpop.f32.mrb[5].mxu0  ;;  %v1032_v3 = vrot.slane %v911_v60, 1 }
  0xff   : > { %v914_v62 = vpop.f32.mrb[6].mxu0  ;;  %v1119_v61 = vld [vmem:[%s1626_s19 + $0x7] sm:$0x1] }
 0x100   : > { %v1392_v63 = vpop.f32.mrb[7].mxu0 }
 0x105   : > { %v1016_v1 = vpop.f32.mrb[8].mxu0 }
 0x106   : > { %v1036_v4 = vrot.slane %v1016_v1, %v1028_v0  ;;  %v1403_v6 = vpop.f32.mrb[9].mxu0 }
 0x107   : > { %v1019_v7 = vpop.f32.mrb[10].mxu0 }
 0x108   : > { %v1404_v8 = vpop.f32.mrb[11].mxu0  ;;  %v1037_v10 = vsel %vm1031_vm11, %v1036_v4, %v1032_v3 }
 0x109   : > { %1040 = vrot.lane.b32.xlu1 %v1037_v10, %s1463_s9 }
 0x168   : > { %v865_v11 = vpop.f32.mrb[0].mxu1 }
 0x169   : > { %v1385_v12 = vpop.f32.mrb[1].mxu1  ;;  %v1025_v15 = vrot.slane %v865_v11, 7 }
 0x16a   : > { %v868_v13 = vpop.f32.mrb[2].mxu1 }
 0x16b   : > { %v1386_v14 = vpop.f32.mrb[3].mxu1 }
 0x170   : > { %v972_v16 = vpop.f32.mrb[4].mxu1 }
 0x171   : > { %v1029_v17 = vrot.slane %v972_v16, %v1028_v0  ;;  %v1397_v18 = vpop.f32.mrb[5].mxu1 }
 0x172   : > { %v975_v19 = vpop.f32.mrb[6].mxu1 }
 0x173   : > { %v1030_v20 = vsel %vm1024_vm13, %v1029_v17, %v1025_v15  ;;  %v1398_v21 = vpop.f32.mrb[7].mxu1 }
 0x174   : > { %v1608_v22 = vadd.f32 %v1030_v20, %v814_v56 }
 0x176   : > { %v1129_v13 = vsel %vm823_vm10, %v1608_v22, 0.0  ;;  %v1149_v14 = vmul.f32 %v1608_v22, %v1608_v22 }
 0x177   : > { %v1130_v15 = vrot.slane %v1129_v13, 4 }
 0x178   : > { %v1150_v16 = vsel %vm823_vm10, %v1149_v14, 0.0 }
 0x179   : > { %v1131_v17 = vadd.f32 %v1130_v15, %v1129_v13  ;;  %v1151_v18 = vrot.slane %v1150_v16, 4 }
 0x17b   : > { %v1041_v23 = vpop.permute.xlu1 %1040  ;;  %v1132_v19 = vrot.slane %v1131_v17, 2  ;;  %v1152_v20 = vadd.f32 %v1151_v18, %v1150_v16 }
 0x17c   : > { %v1043_v24 = vadd.f32 %v1041_v23, %v814_v56 }
 0x17d   : > { %v1133_v21 = vadd.f32 %v1132_v19, %v1131_v17  ;;  %v1153_v23 = vrot.slane %v1152_v20, 2 }
 0x17e   : > { %v1044_v25 = vsel %vm823_vm10, %v1608_v22, %v1043_v24  ;;  %v1137_v26 = vsel %vm1136_vm14, %v1043_v24, 0.0  ;;  %v1157_v27 = vmul.f32 %v1043_v24, %v1043_v24 }
 0x17f   : > { %v1045_v5 = vpack.c.bf16 %v1044_v25, %v1044_v25  ;;  %v1138_v28 = vrot.slane %v1137_v26, 4  ;;  %v1134_v24 = vrot.slane %v1133_v21, 1  ;;  %v1154_v25 = vadd.f32 %v1153_v23, %v1152_v20 }
 0x180   : > { %v1158_v29 = vsel %vm1136_vm14, %v1157_v27, 0.0  ;;  %v1170_v27 = vld [vmem:[%s1602_s12] sm:$0x1] }
 0x181   : > { %v1053_v30 = vrot.slane %v1045_v5, %v1555_v9  ;;  %v1139_v31 = vadd.f32 %v1138_v28, %v1137_v26  ;;  %v1159_v32 = vrot.slane %v1158_v29, 4  ;;  %v1135_v26 = vadd.f32 %v1134_v24, %v1133_v21 }
 0x183   : > { %v1054_v33 = vcombine.high %v1053_v30, %v1053_v30  ;;  %v1061_v2 = vrot.slane %v1053_v30, %v1555_v9  ;;  %v1140_v34 = vrot.slane %v1139_v31, 2  ;;  %v1160_v35 = vadd.f32 %v1159_v32, %v1158_v29 }
 0x184   : > { %v1155_v29 = vrot.slane %v1154_v25, 1 }
 0x185   : > { %v1068_v38 = vrot.slane %v1054_v33, %v1555_v9  ;;  %v1069_v39 = vcombine.high %v1061_v2, %v1061_v2  ;;  %v1072_v40 = vunpack.i.h.s16 %v1061_v2  ;;  %v1359_v41 = vpack.i.b16 %v1061_v2, %v1061_v2 }
 0x186   : > { %v1141_v43 = vadd.f32 %v1140_v34, %v1139_v31  ;;  %v1161_v44 = vrot.slane %v1160_v35, 2  ;;  %v1156_v30 = vadd.f32 %v1155_v29, %v1154_v25  ;;  %v1174_v31 = vld [vmem:[%s1616_s16] sm:$0x1] }
 0x187   : > { %v1070_v48 = vcombine.high %v1068_v38, %v1068_v38  ;;  %v1074_v49 = vunpack.i.h.s16 %v1068_v38  ;;  %v1076_v50 = vunpack.i.h.s16 %v1069_v39  ;;  %v1080_v51 = vpack.i.b16 %v1072_v40, %v1072_v40 }
 0x188   : > { %v1360_v54 = vpack.i.b16 %v1068_v38, %v1068_v38  ;;  %v1361_v9 = vpack.i.b16 %v1069_v39, %v1069_v39  ;;  %v1099_v55 = vsel %vm1629_vm1, %v1359_v41, %v1098_v37  ;;  %v1142_v56 = vrot.slane %v1141_v43, 1 }
 0x189   : > { %v1078_v57 = vunpack.i.h.s16 %v1070_v48  ;;  %v1082_v58 = vpack.i.b16 %v1074_v49, %v1074_v49  ;;  %v1084_v59 = vpack.i.b16 %v1076_v50, %v1076_v50  ;;  %v1362_v60 = vpack.i.b16 %v1070_v48, %v1070_v48  ;;  %1100 = vst [vmem:[%s1626_s19] sm:$0x1] %v1099_v55 }
 0x18a   : > { %v1102_v62 = vsel %vm1629_vm1, %v1080_v51, %v1101_v42  ;;  %v1105_v63 = vsel %vm1629_vm1, %v1360_v54, %v1104_v45  ;;  %v1111_v0 = vsel %vm1629_vm1, %v1361_v9, %v1110_v47  ;;  %v1143_v1 = vadd.f32 %v1142_v56, %v1141_v43 }
 0x18b   : > { %v1086_v3 = vpack.i.b16 %v1078_v57, %v1078_v57  ;;  %1103 = vst [vmem:[%s1626_s19 + $0x1] sm:$0x1] %v1102_v62  ;;  %1106 = vst [vmem:[%s1626_s19 + $0x2] sm:$0x1] %v1105_v63  ;;  %v1108_v4 = vsel %vm1629_vm1, %v1082_v58, %v1107_v46  ;;  %v1114_v6 = vsel %vm1629_vm1, %v1084_v59, %v1113_v52 }
 0x18c   : > { %1112 = vst [vmem:[%s1626_s19 + $0x4] sm:$0x1] %v1111_v0  ;;  %v1117_v7 = vsel %vm1629_vm1, %v1362_v60, %v1116_v53  ;;  %1109 = vst [vmem:[%s1626_s19 + $0x3] sm:$0x1] %v1108_v4  ;;  %1145 = vrot.lane.b32.xlu1 %v1143_v1, %s1462_s23  ;;  %v1162_v8 = vadd.f32 %v1161_v44, %v1160_v35 }
 0x18d   : > { %1115 = vst [vmem:[%s1626_s19 + $0x5] sm:$0x1] %v1114_v6  ;;  %1118 = vst [vmem:[%s1626_s19 + $0x6] sm:$0x1] %v1117_v7  ;;  %v1120_v10 = vsel %vm1629_vm1, %v1086_v3, %v1119_v61 }
 0x18e   : > { %1121 = vst [vmem:[%s1626_s19 + $0x7] sm:$0x1] %v1120_v10  ;;  %v1163_v11 = vrot.slane %v1162_v8, 1 }
 0x190   : > { %v1164_v12 = vadd.f32 %v1163_v11, %v1162_v8 }
 0x192   : > { %1166 = vrot.lane.b32.xlu0 %v1164_v12, %s1462_s23 }
 0x1fe   : > { %v1146_v5 = vpop.permute.xlu1 %1145 }
 0x1ff   : > { %v1148_v28 = vadd.f32 %v1146_v5, %v1135_v26 }
 0x201   : > { %v1171_v22 = vadd.f32 %v1170_v27, %v1148_v28 }
 0x203   : > { %1173 = vst.msk [vmem:[%s1602_s12] sm:$0x1] %vm1126_vm12, %v1171_v22 }
 0x204   : > { %v1167_v32 = vpop.permute.xlu0 %1166 }
 0x205   : > { %v1169_v33 = vadd.f32 %v1167_v32, %v1156_v30 }
 0x207   : > { %v1175_v2 = vadd.f32 %v1174_v31, %v1169_v33 }
 0x209   : > { %1176 = vst.msk [vmem:[%s1616_s16] sm:$0x1] %vm1126_vm12, %v1175_v2 }
 0x20a PF: > { %s19_s29 = sadd.s32 1, %s1457_s29   ;;  %s1699_s27 = smov %s1453_s28 }
 0x20b   : > { %p16_p5 = scmp.ge.s32.totalorder %s19_s29, 4   ;;  %s1700_s28 = smov %s1702_s30 }
 0x20d   :  { %18 = sbr.rel (!%p16_p5) target bundleno = 2 (0x2), region = 108 }

</bundles_post_ra>
